<compile_context>
chip_gen: v7x
topology: tpu7x:2x2x1
jax: 0.10.0
libtpu: 0.0.40
codegen_flags: <defaults>
</compile_context>

<pallas_src>
import functools

import jax
import jax.numpy as jnp
from jax.experimental import pallas as pl
from jax.experimental.pallas import tpu as pltpu

STATE_DIM = 75
ACTION_DIM = 5
NUM_AGENTS = 2
OUTPUT_DIM = 32
HIDDEN_DIM = 128
INPUT_DIM = (STATE_DIM + ACTION_DIM) * NUM_AGENTS   # 160
S_FLAT = NUM_AGENTS * STATE_DIM                     # 150
A_FLAT = NUM_AGENTS * ACTION_DIM                    # 10

_EPS = 1e-5
_SLOPE = 0.01          # nn.LeakyReLU default negative_slope
_NUM_PHASES = 4        # 3 stats sweeps (BN1, BN2, BN3) + 1 apply sweep
_PROD_BLOCK = 512      # batch-tile rows for large batches (multiple of 256)

# rows of the packed (8, 128) gamma/beta slab
_R_BN1_G, _R_BN1_B = 0, 1
_R_BN2_G, _R_BN2_B = 2, 3
_R_LN_G, _R_LN_B = 4, 5
_R_BN3_G, _R_BN3_B = 6, 7

# rows of the (16, 128) BN-statistics scratch: [shift, sum(h-shift), sum((h-shift)^2)]
_S_BN1 = 0
_S_BN2 = 3
_S_BN3 = 6
_STATS_ROWS = 16


def _leaky_relu(h):
    return jnp.where(h >= 0, h, _SLOPE * h)


def _encoder_kernel(s_ref, a_ref, w1s_ref, w1a_ref, w2_ref, w3_ref, gb_ref,
                    out_ref, stats_ref, *, batch, block, padded_batch):
    p = pl.program_id(0)      # phase axis (sequential)
    i = pl.program_id(1)      # batch-tile axis (sequential: BN stats accumulate)

    inv_b = 1.0 / batch                     # static python floats
    inv_n0 = 1.0 / min(batch, block)        # valid rows in tile 0
    ragged = padded_batch != batch          # static

    if ragged:
        rows = i * block + jax.lax.broadcasted_iota(jnp.int32, (block, 1), 0)
        mask = (rows < batch).astype(jnp.float32)
    else:
        mask = None

    def accumulate(h, r0, width):
        """Shifted single-pass moments accumulated across batch tiles."""
        hm = h if mask is None else h * mask

        @pl.when(i == 0)
        def _():
            c0 = jnp.sum(hm, axis=0, keepdims=True) * inv_n0
            z = jnp.zeros_like(c0)
            stats_ref[r0:r0 + 1, 0:width] = c0          # shift = tile-0 mean
            stats_ref[r0 + 1:r0 + 2, 0:width] = z       # sum(h - shift)
            stats_ref[r0 + 2:r0 + 3, 0:width] = z       # sum((h - shift)^2)

        c = stats_ref[r0:r0 + 1, 0:width]
        d = hm - c if mask is None else (h - c) * mask
        stats_ref[r0 + 1:r0 + 2, 0:width] += jnp.sum(d, axis=0, keepdims=True)
        stats_ref[r0 + 2:r0 + 3, 0:width] += jnp.sum(d * d, axis=0, keepdims=True)

    def bn_apply(h, r0, width, g_row, b_row):
        """Training-mode BatchNorm1d from the globally accumulated moments."""
        c = stats_ref[r0:r0 + 1, 0:width]
        dm = stats_ref[r0 + 1:r0 + 2, 0:width] * inv_b
        var = stats_ref[r0 + 2:r0 + 3, 0:width] * inv_b - dm * dm
        g = gb_ref[g_row:g_row + 1, 0:width]
        beta = gb_ref[b_row:b_row + 1, 0:width]
        return (h - (c + dm)) * jax.lax.rsqrt(var + _EPS) * g + beta

    def h1():
        # Linear(160,128) without bias (cancels under train-mode BN); the concat
        # is replaced by two matmuls against a row-permuted w1 (bf16 MXU, f32 acc).
        h = jnp.dot(s_ref[...], w1s_ref[...], preferred_element_type=jnp.float32)
        return h + jnp.dot(a_ref[...], w1a_ref[...],
                           preferred_element_type=jnp.float32)

    def h2():
        h = _leaky_relu(bn_apply(h1(), _S_BN1, HIDDEN_DIM, _R_BN1_G, _R_BN1_B))
        return jnp.dot(h.astype(jnp.bfloat16), w2_ref[...],
                       preferred_element_type=jnp.float32)

    def out_pre_bn():
        h = _leaky_relu(bn_apply(h2(), _S_BN2, OUTPUT_DIM, _R_BN2_G, _R_BN2_B))
        # LayerNorm over features (exact two-pass form; whole row is resident)
        lmu = jnp.mean(h, axis=1, keepdims=True)
        ctr = h - lmu
        lvar = jnp.mean(ctr * ctr, axis=1, keepdims=True)
        e = (ctr * jax.lax.rsqrt(lvar + _EPS)
             * gb_ref[_R_LN_G:_R_LN_G + 1, 0:OUTPUT_DIM]
             + gb_ref[_R_LN_B:_R_LN_B + 1, 0:OUTPUT_DIM])
        return jnp.dot(e.astype(jnp.bfloat16), w3_ref[...],
                       preferred_element_type=jnp.float32)

    @pl.when(p == 0)
    def _():          # sweep 1: BN1 batch moments of the first Linear
        accumulate(h1(), _S_BN1, HIDDEN_DIM)

    @pl.when(p == 1)
    def _():          # sweep 2: BN2 batch moments
        accumulate(h2(), _S_BN2, OUTPUT_DIM)

    @pl.when(p == 2)
    def _():          # sweep 3: BN3 batch moments of the output Linear
        accumulate(out_pre_bn(), _S_BN3, 2 * OUTPUT_DIM)

    @pl.when(p == _NUM_PHASES - 1)
    def _():          # sweep 4: apply BN3; lane-dense packed store (2 rows / 128 lanes)
        o = bn_apply(out_pre_bn(), _S_BN3, 2 * OUTPUT_DIM, _R_BN3_G, _R_BN3_B)
        out_ref[...] = jnp.concatenate(
            [o[0:block // 2, :], o[block // 2:block, :]], axis=1)


def _round_up(x, m):
    return -(-x // m) * m


@jax.jit
def teamwork_situation_encoder(states, actions, kp):
    """states: [B, num_agents, state_dim], actions: [B, num_agents, action_dim].

    Feed bf16 states/actions to avoid any wrapper-side HBM copy of the inputs.
    """
    b = states.shape[0]
    # free reshapes (row-major merge of trailing dims) replace concat+flatten
    s = states.reshape(b, S_FLAT)
    a = actions.reshape(b, A_FLAT)
    if s.dtype != jnp.bfloat16:   # fallback only; prefer feeding bf16 directly
        s = s.astype(jnp.bfloat16)
        a = a.astype(jnp.bfloat16)

    # batch tile: 512 rows in production, single rounded-up tile for small B
    # TODO(synk): smarter tile chooser for batch sizes that are not multiples
    #             of 512 (the last tile is padded with masked zero rows).
    block = _PROD_BLOCK if b >= _PROD_BLOCK else _round_up(b, 16)
    padded = _round_up(b, block)
    if padded != b:
        s = jnp.pad(s, ((0, padded - b), (0, 0)))
        a = jnp.pad(a, ((0, padded - b), (0, 0)))
    tiles = padded // block
    last = _NUM_PHASES - 1

    def tile_map(p, i):
        return (i, 0)

    def const_map(p, i):            # weights stay resident across the grid
        return (0, 0)

    def out_map(p, i):              # only the apply sweep emits output blocks
        return (jnp.where(p == last, i, 0), 0)

    kernel = functools.partial(
        _encoder_kernel, batch=b, block=block, padded_batch=padded)

    grid_spec = pltpu.PrefetchScalarGridSpec(
        num_scalar_prefetch=0,
        grid=(_NUM_PHASES, tiles),
        in_specs=[
            pl.BlockSpec((block, S_FLAT), tile_map),
            pl.BlockSpec((block, A_FLAT), tile_map),
            pl.BlockSpec((S_FLAT, HIDDEN_DIM), const_map),
            pl.BlockSpec((A_FLAT, HIDDEN_DIM), const_map),
            pl.BlockSpec((HIDDEN_DIM, OUTPUT_DIM), const_map),
            pl.BlockSpec((OUTPUT_DIM, 2 * OUTPUT_DIM), const_map),
            pl.BlockSpec((8, HIDDEN_DIM), const_map),
        ],
        out_specs=pl.BlockSpec((block // 2, 4 * OUTPUT_DIM), out_map),
        scratch_shapes=[pltpu.VMEM((_STATS_ROWS, HIDDEN_DIM), jnp.float32)],
    )

    # cost estimate / per-tile (not whole-batch) VMEM budget
    mm1 = 2 * padded * (S_FLAT + A_FLAT) * HIDDEN_DIM
    mm2 = 2 * padded * HIDDEN_DIM * OUTPUT_DIM
    mm3 = 2 * padded * OUTPUT_DIM * (2 * OUTPUT_DIM)
    flops = 4 * mm1 + 3 * mm2 + 2 * mm3
    bytes_w = ((S_FLAT + A_FLAT) * HIDDEN_DIM * 2
               + HIDDEN_DIM * OUTPUT_DIM * 2
               + OUTPUT_DIM * 2 * OUTPUT_DIM * 2
               + 8 * HIDDEN_DIM * 4)
    bytes_accessed = (_NUM_PHASES * padded * (S_FLAT + A_FLAT) * 2
                      + bytes_w + (padded // 2) * 4 * OUTPUT_DIM * 4)
    tile_in = block * (S_FLAT + A_FLAT) * 2
    tile_out = (block // 2) * 4 * OUTPUT_DIM * 4
    temps = 2 * block * (HIDDEN_DIM + 4 * OUTPUT_DIM) * 4
    vmem_limit = int(min(32 << 20,
                         max(4 << 20,
                             2 * (tile_in + tile_out) + bytes_w
                             + _STATS_ROWS * HIDDEN_DIM * 4 + temps + (1 << 20))))

    out = pl.pallas_call(
        kernel,
        out_shape=jax.ShapeDtypeStruct((padded // 2, 4 * OUTPUT_DIM), jnp.float32),
        grid_spec=grid_spec,
        compiler_params=pltpu.CompilerParams(
            dimension_semantics=("arbitrary", "arbitrary"),
            vmem_limit_bytes=vmem_limit),
        cost_estimate=pl.CostEstimate(
            flops=flops,
            transcendentals=2 * padded + 4 * (HIDDEN_DIM + 3 * OUTPUT_DIM),
            bytes_accessed=bytes_accessed),
    )(s, a, kp["w1s"], kp["w1a"], kp["w2"], kp["w3"], kp["gb"])

    # unpack: out row k of tile i holds batch rows (i*block + k) in lanes 0:64
    # and (i*block + block//2 + k) in lanes 64:128
    out = out.reshape(tiles, block // 2, 2, 2 * OUTPUT_DIM)
    out = jnp.transpose(out, (0, 2, 1, 3)).reshape(padded, 2 * OUTPUT_DIM)[:b]
    return out[:, :OUTPUT_DIM], out[:, OUTPUT_DIM:]


def init_params(key):
    """PyTorch-layout parameters (with Linear biases) for the f32 reference.

    Weight matrices are rounded through bf16 once so the kernel (bf16 MXU
    operands) and the reference share the exact same weight values.
    """
    ks = jax.random.split(key, 7)

    def lin(k, fan_in, fan_out):
        bound = fan_in ** -0.5
        kw, kb = jax.random.split(k)
        w = jax.random.uniform(kw, (fan_in, fan_out), jnp.float32, -bound, bound)
        w = w.astype(jnp.bfloat16).astype(jnp.float32)
        bb = jax.random.uniform(kb, (1, fan_out), jnp.float32, -bound, bound)
        return w, bb

    def affine(k, n):
        kg, kb = jax.random.split(k)
        g = 1.0 + 0.1 * jax.random.normal(kg, (1, n), jnp.float32)
        bb = 0.1 * jax.random.normal(kb, (1, n), jnp.float32)
        return g, bb

    w1, b1 = lin(ks[0], INPUT_DIM, HIDDEN_DIM)
    w2, b2 = lin(ks[1], HIDDEN_DIM, OUTPUT_DIM)
    w3, b3 = lin(ks[2], OUTPUT_DIM, 2 * OUTPUT_DIM)
    bn1_g, bn1_b = affine(ks[3], HIDDEN_DIM)
    bn2_g, bn2_b = affine(ks[4], OUTPUT_DIM)
    ln_g, ln_b = affine(ks[5], OUTPUT_DIM)
    bn3_g, bn3_b = affine(ks[6], 2 * OUTPUT_DIM)

    return {
        "w1": w1, "b1": b1, "bn1_g": bn1_g, "bn1_b": bn1_b,
        "w2": w2, "b2": b2, "bn2_g": bn2_g, "bn2_b": bn2_b,
        "ln_g": ln_g, "ln_b": ln_b,
        "w3": w3, "b3": b3, "bn3_g": bn3_g, "bn3_b": bn3_b,
    }


def pack_params(p):
    """One-time conversion to the kernel layout.

    * w1 rows are permuted so the (free) reshapes of states/actions feed the
      first matmul directly (no HBM concat of x).
    * Linear biases are dropped: valid ONLY for training-mode BatchNorm (the
      batch-mean subtraction cancels them exactly); eval-mode / running-stats
      BN would require reinstating b1/b2/b3.
    * Matmul operands (w1s/w1a/w2/w3) are stored in bf16 (MXU path); the
      gamma/beta slab stays f32 for the VPU/EUP normalization math.
    * All gamma/beta vectors go into a single (8, 128) f32 slab -> one tile,
      one resident DMA.
    """
    per = STATE_DIM + ACTION_DIM
    w1 = p["w1"]
    w1s = jnp.concatenate(
        [w1[i * per: i * per + STATE_DIM] for i in range(NUM_AGENTS)], axis=0)
    w1a = jnp.concatenate(
        [w1[i * per + STATE_DIM: (i + 1) * per] for i in range(NUM_AGENTS)], axis=0)

    def row(v):
        v = v.reshape(-1).astype(jnp.float32)
        return jnp.pad(v, (0, HIDDEN_DIM - v.shape[0]))

    gb = jnp.stack([
        row(p["bn1_g"]), row(p["bn1_b"]),
        row(p["bn2_g"]), row(p["bn2_b"]),
        row(p["ln_g"]), row(p["ln_b"]),
        row(p["bn3_g"]), row(p["bn3_b"]),
    ], axis=0)  # (8, 128)

    return {
        "w1s": w1s.astype(jnp.bfloat16),
        "w1a": w1a.astype(jnp.bfloat16),
        "w2": p["w2"].astype(jnp.bfloat16),
        "w3": p["w3"].astype(jnp.bfloat16),
        "gb": gb,
    }


def _reference(states, actions, params):
    """Pure-JAX f32 reference: exact PyTorch forward (concat + biases included)."""
    b = states.shape[0]
    hi = jax.lax.Precision.HIGHEST
    x = jnp.concatenate([states.astype(jnp.float32), actions.astype(jnp.float32)],
                        axis=2).reshape(b, -1)

    def bn(h, g, be):
        mu = jnp.mean(h, axis=0, keepdims=True)
        var = jnp.mean((h - mu) ** 2, axis=0, keepdims=True)
        return (h - mu) / jnp.sqrt(var + _EPS) * g + be

    def lrelu(h):
        return jnp.where(h >= 0, h, _SLOPE * h)

    h = lrelu(bn(jnp.dot(x, params["w1"], precision=hi) + params["b1"],
                 params["bn1_g"], params["bn1_b"]))
    h = lrelu(bn(jnp.dot(h, params["w2"], precision=hi) + params["b2"],
                 params["bn2_g"], params["bn2_b"]))
    lmu = jnp.mean(h, axis=1, keepdims=True)
    lvar = jnp.mean((h - lmu) ** 2, axis=1, keepdims=True)
    e = (h - lmu) / jnp.sqrt(lvar + _EPS) * params["ln_g"] + params["ln_b"]
    o = bn(jnp.dot(e, params["w3"], precision=hi) + params["b3"],
           params["bn3_g"], params["bn3_b"])
    return o[:, :OUTPUT_DIM], o[:, OUTPUT_DIM:]


if __name__ == "__main__":
    key = jax.random.PRNGKey(0)
    k_p, k_s, k_a, k_s2, k_a2 = jax.random.split(key, 5)

    params = init_params(k_p)
    kparams = pack_params(params)

    # bf16 activations in the MXU path vs. the pure-f32 reference -> ~1e-2
    # tolerance (the bf16 rounding of the inter-layer activations dominates).
    ATOL = RTOL = 3e-2

    # ---- small-batch check (single tile, ragged-mask path) ----
    B = 8  # BatchNorm1d training mode needs B > 1
    states = jax.random.normal(k_s, (B, NUM_AGENTS, STATE_DIM),
                               jnp.float32).astype(jnp.bfloat16)
    actions = jax.random.normal(k_a, (B, NUM_AGENTS, ACTION_DIM),
                                jnp.float32).astype(jnp.bfloat16)
    mean, log_var = teamwork_situation_encoder(states, actions, kparams)
    jax.block_until_ready((mean, log_var))
    ref_mean, ref_lv = _reference(states, actions, params)
    assert mean.shape == (B, OUTPUT_DIM) and log_var.shape == (B, OUTPUT_DIM)
    assert jnp.allclose(mean, ref_mean, atol=ATOL, rtol=RTOL)
    assert jnp.allclose(log_var, ref_lv, atol=ATOL, rtol=RTOL)

    # ---- multi-tile check (2 batch tiles, cross-tile BN stats, masked tail) ----
    B2 = 520
    states2 = jax.random.normal(k_s2, (B2, NUM_AGENTS, STATE_DIM),
                                jnp.float32).astype(jnp.bfloat16)
    actions2 = jax.random.normal(k_a2, (B2, NUM_AGENTS, ACTION_DIM),
                                 jnp.float32).astype(jnp.bfloat16)
    mean2, lv2 = teamwork_situation_encoder(states2, actions2, kparams)
    jax.block_until_ready((mean2, lv2))
    ref_mean2, ref_lv2 = _reference(states2, actions2, params)
    assert jnp.allclose(mean2, ref_mean2, atol=ATOL, rtol=RTOL)
    assert jnp.allclose(lv2, ref_lv2, atol=ATOL, rtol=RTOL)

    print("KERNEL_OK")
</pallas_src>

<mosaic_0001>
module attributes {stable_mosaic.version = 11 : i64} {
  func.func @_encoder_kernel(%arg0: i32, %arg1: i32, %arg2: memref<16x150xbf16, #tpu.memory_space<vmem>>, %arg3: memref<16x10xbf16, #tpu.memory_space<vmem>>, %arg4: memref<150x128xbf16, #tpu.memory_space<vmem>>, %arg5: memref<10x128xbf16, #tpu.memory_space<vmem>>, %arg6: memref<128x32xbf16, #tpu.memory_space<vmem>>, %arg7: memref<32x64xbf16, #tpu.memory_space<vmem>>, %arg8: memref<8x128xf32, #tpu.memory_space<vmem>>, %arg9: memref<8x128xf32, #tpu.memory_space<vmem>>, %arg10: memref<16x128xf32, #tpu.memory_space<vmem>>) attributes {dimension_semantics = [#tpu.dimension_semantics<arbitrary>, #tpu.dimension_semantics<arbitrary>], iteration_bounds = array<i64: 4, 1>, scalar_prefetch = 0 : i64, scratch_operands = 1 : i64, tpu.core_type = #tpu.core_type<tc>, window_params = [{transform_indices = @transform_0, window_bounds = array<i64: 16, 150>}, {transform_indices = @transform_1, window_bounds = array<i64: 16, 10>}, {pipeline_mode = #tpu.pipeline_mode<synchronous>, transform_indices = @transform_2, window_bounds = array<i64: 150, 128>}, {pipeline_mode = #tpu.pipeline_mode<synchronous>, transform_indices = @transform_3, window_bounds = array<i64: 10, 128>}, {pipeline_mode = #tpu.pipeline_mode<synchronous>, transform_indices = @transform_4, window_bounds = array<i64: 128, 32>}, {pipeline_mode = #tpu.pipeline_mode<synchronous>, transform_indices = @transform_5, window_bounds = array<i64: 32, 64>}, {pipeline_mode = #tpu.pipeline_mode<synchronous>, transform_indices = @transform_6, window_bounds = array<i64: 8, 128>}, {transform_indices = @transform_7, window_bounds = array<i64: 8, 128>}]} {
    %c16_i32 = arith.constant 16 : i32
    %0 = arith.muli %arg1, %c16_i32 : i32
    %1 = tpu.iota {dimensions = array<i32: 0>} : vector<16x1xi32>
    %2 = vector.broadcast %0 : i32 to vector<16x1xi32>
    %3 = arith.addi %2, %1 : vector<16x1xi32>
    %c8_i32 = arith.constant 8 : i32
    %4 = vector.broadcast %c8_i32 : i32 to vector<16x1xi32>
    %5 = arith.cmpi slt, %3, %4 : vector<16x1xi32>
    %6 = arith.extui %5 : vector<16x1xi1> to vector<16x1xi32>
    %7 = arith.sitofp %6 : vector<16x1xi32> to vector<16x1xf32>
    %c0_i32 = arith.constant 0 : i32
    %8 = arith.cmpi eq, %arg0, %c0_i32 : i32
    %9 = arith.extui %8 : i1 to i32
    %c0_i32_0 = arith.constant 0 : i32
    %10 = arith.cmpi ne, %9, %c0_i32_0 : i32
    scf.if %10 {
      %c0 = arith.constant 0 : index
      %c0_4 = arith.constant 0 : index
      %20 = vector.load %arg2[%c0, %c0_4] : memref<16x150xbf16, #tpu.memory_space<vmem>>, vector<16x150xbf16>
      %c0_5 = arith.constant 0 : index
      %c0_6 = arith.constant 0 : index
      %21 = vector.load %arg4[%c0_5, %c0_6] : memref<150x128xbf16, #tpu.memory_space<vmem>>, vector<150x128xbf16>
      %cst = arith.constant dense<0.000000e+00> : vector<16x128xf32>
      %22 = tpu.matmul %20, %21, %cst {dimension_numbers = #tpu.dot_dimension_numbers<[1], [0], [0], [1], [0, 0, 1, 1], [], []>} : vector<16x150xbf16>, vector<150x128xbf16>, vector<16x128xf32> -> vector<16x128xf32>
      %c0_7 = arith.constant 0 : index
      %c0_8 = arith.constant 0 : index
      %23 = vector.load %arg3[%c0_7, %c0_8] : memref<16x10xbf16, #tpu.memory_space<vmem>>, vector<16x10xbf16>
      %c0_9 = arith.constant 0 : index
      %c0_10 = arith.constant 0 : index
      %24 = vector.load %arg5[%c0_9, %c0_10] : memref<10x128xbf16, #tpu.memory_space<vmem>>, vector<10x128xbf16>
      %cst_11 = arith.constant dense<0.000000e+00> : vector<16x128xf32>
      %25 = tpu.matmul %23, %24, %cst_11 {dimension_numbers = #tpu.dot_dimension_numbers<[1], [0], [0], [1], [0, 0, 1, 1], [], []>} : vector<16x10xbf16>, vector<10x128xbf16>, vector<16x128xf32> -> vector<16x128xf32>
      %26 = arith.addf %22, %25 : vector<16x128xf32>
      %27 = vector.broadcast %7 : vector<16x1xf32> to vector<16x128xf32>
      %28 = arith.mulf %26, %27 : vector<16x128xf32>
      %c0_i32_12 = arith.constant 0 : i32
      %29 = arith.cmpi eq, %arg1, %c0_i32_12 : i32
      %30 = arith.extui %29 : i1 to i32
      %c0_i32_13 = arith.constant 0 : i32
      %31 = arith.cmpi ne, %30, %c0_i32_13 : i32
      scf.if %31 {
        %cst_24 = arith.constant dense<0.000000e+00> : vector<128xf32>
        %48 = vector.multi_reduction <add>, %28, %cst_24 [0] : vector<16x128xf32> to vector<128xf32>
        %49 = vector.shape_cast %48 : vector<128xf32> to vector<1x128xf32>
        %cst_25 = arith.constant 1.250000e-01 : f32
        %50 = vector.broadcast %cst_25 : f32 to vector<1x128xf32>
        %51 = arith.mulf %49, %50 : vector<1x128xf32>
        %cst_26 = arith.constant 0.000000e+00 : f32
        %52 = vector.broadcast %cst_26 : f32 to vector<1x128xf32>
        %c0_27 = arith.constant 0 : index
        %c0_28 = arith.constant 0 : index
        %53 = vector.load %arg10[%c0_27, %c0_28] : memref<16x128xf32, #tpu.memory_space<vmem>>, vector<1x128xf32>
        tpu.vector_store %arg10[%c0_27, %c0_28], %51 {strides = array<i32>} : memref<16x128xf32, #tpu.memory_space<vmem>>, vector<1x128xf32>,
        %c1_29 = arith.constant 1 : index
        %c0_30 = arith.constant 0 : index
        %54 = vector.load %arg10[%c1_29, %c0_30] : memref<16x128xf32, #tpu.memory_space<vmem>>, vector<1x128xf32>
        tpu.vector_store %arg10[%c1_29, %c0_30], %52 {strides = array<i32>} : memref<16x128xf32, #tpu.memory_space<vmem>>, vector<1x128xf32>,
        %c2_31 = arith.constant 2 : index
        %c0_32 = arith.constant 0 : index
        %55 = vector.load %arg10[%c2_31, %c0_32] : memref<16x128xf32, #tpu.memory_space<vmem>>, vector<1x128xf32>
        tpu.vector_store %arg10[%c2_31, %c0_32], %52 {strides = array<i32>} : memref<16x128xf32, #tpu.memory_space<vmem>>, vector<1x128xf32>,
      } else {
      }
      %c0_14 = arith.constant 0 : index
      %c0_15 = arith.constant 0 : index
      %32 = vector.load %arg10[%c0_14, %c0_15] : memref<16x128xf32, #tpu.memory_space<vmem>>, vector<1x128xf32>
      %33 = vector.broadcast %32 : vector<1x128xf32> to vector<16x128xf32>
      %34 = arith.subf %26, %33 : vector<16x128xf32>
      %35 = vector.broadcast %7 : vector<16x1xf32> to vector<16x128xf32>
      %36 = arith.mulf %34, %35 : vector<16x128xf32>
      %c1 = arith.constant 1 : index
      %c0_16 = arith.constant 0 : index
      %37 = vector.load %arg10[%c1, %c0_16] : memref<16x128xf32, #tpu.memory_space<vmem>>, vector<1x128xf32>
      %cst_17 = arith.constant dense<0.000000e+00> : vector<128xf32>
      %38 = vector.multi_reduction <add>, %36, %cst_17 [0] : vector<16x128xf32> to vector<128xf32>
      %39 = vector.shape_cast %38 : vector<128xf32> to vector<1x128xf32>
      %40 = arith.addf %37, %39 : vector<1x128xf32>
      %c1_18 = arith.constant 1 : index
      %c0_19 = arith.constant 0 : index
      %41 = vector.load %arg10[%c1_18, %c0_19] : memref<16x128xf32, #tpu.memory_space<vmem>>, vector<1x128xf32>
      tpu.vector_store %arg10[%c1_18, %c0_19], %40 {strides = array<i32>} : memref<16x128xf32, #tpu.memory_space<vmem>>, vector<1x128xf32>,
      %c2 = arith.constant 2 : index
      %c0_20 = arith.constant 0 : index
      %42 = vector.load %arg10[%c2, %c0_20] : memref<16x128xf32, #tpu.memory_space<vmem>>, vector<1x128xf32>
      %43 = arith.mulf %36, %36 : vector<16x128xf32>
      %cst_21 = arith.constant dense<0.000000e+00> : vector<128xf32>
      %44 = vector.multi_reduction <add>, %43, %cst_21 [0] : vector<16x128xf32> to vector<128xf32>
      %45 = vector.shape_cast %44 : vector<128xf32> to vector<1x128xf32>
      %46 = arith.addf %42, %45 : vector<1x128xf32>
      %c2_22 = arith.constant 2 : index
      %c0_23 = arith.constant 0 : index
      %47 = vector.load %arg10[%c2_22, %c0_23] : memref<16x128xf32, #tpu.memory_space<vmem>>, vector<1x128xf32>
      tpu.vector_store %arg10[%c2_22, %c0_23], %46 {strides = array<i32>} : memref<16x128xf32, #tpu.memory_space<vmem>>, vector<1x128xf32>,
    } else {
    }
    %c1_i32 = arith.constant 1 : i32
    %11 = arith.cmpi eq, %arg0, %c1_i32 : i32
    %12 = arith.extui %11 : i1 to i32
    %c0_i32_1 = arith.constant 0 : i32
    %13 = arith.cmpi ne, %12, %c0_i32_1 : i32
    scf.if %13 {
      %c0 = arith.constant 0 : index
      %c0_4 = arith.constant 0 : index
      %20 = vector.load %arg2[%c0, %c0_4] : memref<16x150xbf16, #tpu.memory_space<vmem>>, vector<16x150xbf16>
      %c0_5 = arith.constant 0 : index
      %c0_6 = arith.constant 0 : index
      %21 = vector.load %arg4[%c0_5, %c0_6] : memref<150x128xbf16, #tpu.memory_space<vmem>>, vector<150x128xbf16>
      %cst = arith.constant dense<0.000000e+00> : vector<16x128xf32>
      %22 = tpu.matmul %20, %21, %cst {dimension_numbers = #tpu.dot_dimension_numbers<[1], [0], [0], [1], [0, 0, 1, 1], [], []>} : vector<16x150xbf16>, vector<150x128xbf16>, vector<16x128xf32> -> vector<16x128xf32>
      %c0_7 = arith.constant 0 : index
      %c0_8 = arith.constant 0 : index
      %23 = vector.load %arg3[%c0_7, %c0_8] : memref<16x10xbf16, #tpu.memory_space<vmem>>, vector<16x10xbf16>
      %c0_9 = arith.constant 0 : index
      %c0_10 = arith.constant 0 : index
      %24 = vector.load %arg5[%c0_9, %c0_10] : memref<10x128xbf16, #tpu.memory_space<vmem>>, vector<10x128xbf16>
      %cst_11 = arith.constant dense<0.000000e+00> : vector<16x128xf32>
      %25 = tpu.matmul %23, %24, %cst_11 {dimension_numbers = #tpu.dot_dimension_numbers<[1], [0], [0], [1], [0, 0, 1, 1], [], []>} : vector<16x10xbf16>, vector<10x128xbf16>, vector<16x128xf32> -> vector<16x128xf32>
      %26 = arith.addf %22, %25 : vector<16x128xf32>
      %c0_12 = arith.constant 0 : index
      %c0_13 = arith.constant 0 : index
      %27 = vector.load %arg10[%c0_12, %c0_13] : memref<16x128xf32, #tpu.memory_space<vmem>>, vector<1x128xf32>
      %c1 = arith.constant 1 : index
      %c0_14 = arith.constant 0 : index
      %28 = vector.load %arg10[%c1, %c0_14] : memref<16x128xf32, #tpu.memory_space<vmem>>, vector<1x128xf32>
      %cst_15 = arith.constant 1.250000e-01 : f32
      %29 = vector.broadcast %cst_15 : f32 to vector<1x128xf32>
      %30 = arith.mulf %28, %29 : vector<1x128xf32>
      %c2 = arith.constant 2 : index
      %c0_16 = arith.constant 0 : index
      %31 = vector.load %arg10[%c2, %c0_16] : memref<16x128xf32, #tpu.memory_space<vmem>>, vector<1x128xf32>
      %cst_17 = arith.constant 1.250000e-01 : f32
      %32 = vector.broadcast %cst_17 : f32 to vector<1x128xf32>
      %33 = arith.mulf %31, %32 : vector<1x128xf32>
      %34 = arith.mulf %30, %30 : vector<1x128xf32>
      %35 = arith.subf %33, %34 : vector<1x128xf32>
      %c0_18 = arith.constant 0 : index
      %c0_19 = arith.constant 0 : index
      %36 = vector.load %arg8[%c0_18, %c0_19] : memref<8x128xf32, #tpu.memory_space<vmem>>, vector<1x128xf32>
      %c1_20 = arith.constant 1 : index
      %c0_21 = arith.constant 0 : index
      %37 = vector.load %arg8[%c1_20, %c0_21] : memref<8x128xf32, #tpu.memory_space<vmem>>, vector<1x128xf32>
      %38 = arith.addf %27, %30 : vector<1x128xf32>
      %39 = vector.broadcast %38 : vector<1x128xf32> to vector<16x128xf32>
      %40 = arith.subf %26, %39 : vector<16x128xf32>
      %cst_22 = arith.constant 9.99999974E-6 : f32
      %41 = vector.broadcast %cst_22 : f32 to vector<1x128xf32>
      %42 = arith.addf %35, %41 : vector<1x128xf32>
      %43 = math.rsqrt %42 : vector<1x128xf32>
      %44 = vector.broadcast %43 : vector<1x128xf32> to vector<16x128xf32>
      %45 = arith.mulf %40, %44 : vector<16x128xf32>
      %46 = vector.broadcast %36 : vector<1x128xf32> to vector<16x128xf32>
      %47 = arith.mulf %45, %46 : vector<16x128xf32>
      %48 = vector.broadcast %37 : vector<1x128xf32> to vector<16x128xf32>
      %49 = arith.addf %47, %48 : vector<16x128xf32>
      %cst_23 = arith.constant 0.000000e+00 : f32
      %50 = vector.broadcast %cst_23 : f32 to vector<16x128xf32>
      %51 = arith.cmpf oge, %49, %50 : vector<16x128xf32>
      %cst_24 = arith.constant 0.00999999977 : f32
      %52 = vector.broadcast %cst_24 : f32 to vector<16x128xf32>
      %53 = arith.mulf %52, %49 : vector<16x128xf32>
      %54 = arith.select %51, %49, %53 : vector<16x128xi1>, vector<16x128xf32>
      %55 = arith.truncf %54 : vector<16x128xf32> to vector<16x128xbf16>
      %c0_25 = arith.constant 0 : index
      %c0_26 = arith.constant 0 : index
      %56 = vector.load %arg6[%c0_25, %c0_26] : memref<128x32xbf16, #tpu.memory_space<vmem>>, vector<128x32xbf16>
      %cst_27 = arith.constant dense<0.000000e+00> : vector<16x32xf32>
      %57 = tpu.matmul %55, %56, %cst_27 {dimension_numbers = #tpu.dot_dimension_numbers<[1], [0], [0], [1], [0, 0, 1, 1], [], []>} : vector<16x128xbf16>, vector<128x32xbf16>, vector<16x32xf32> -> vector<16x32xf32>
      %58 = vector.broadcast %7 : vector<16x1xf32> to vector<16x32xf32>
      %59 = arith.mulf %57, %58 : vector<16x32xf32>
      %c0_i32_28 = arith.constant 0 : i32
      %60 = arith.cmpi eq, %arg1, %c0_i32_28 : i32
      %61 = arith.extui %60 : i1 to i32
      %c0_i32_29 = arith.constant 0 : i32
      %62 = arith.cmpi ne, %61, %c0_i32_29 : i32
      scf.if %62 {
        %cst_39 = arith.constant dense<0.000000e+00> : vector<32xf32>
        %79 = vector.multi_reduction <add>, %59, %cst_39 [0] : vector<16x32xf32> to vector<32xf32>
        %80 = vector.shape_cast %79 : vector<32xf32> to vector<1x32xf32>
        %cst_40 = arith.constant 1.250000e-01 : f32
        %81 = vector.broadcast %cst_40 : f32 to vector<1x32xf32>
        %82 = arith.mulf %80, %81 : vector<1x32xf32>
        %cst_41 = arith.constant 0.000000e+00 : f32
        %83 = vector.broadcast %cst_41 : f32 to vector<1x32xf32>
        %c3_42 = arith.constant 3 : index
        %c0_43 = arith.constant 0 : index
        %84 = vector.load %arg10[%c3_42, %c0_43] : memref<16x128xf32, #tpu.memory_space<vmem>>, vector<1x32xf32>
        tpu.vector_store %arg10[%c3_42, %c0_43], %82 {strides = array<i32>} : memref<16x128xf32, #tpu.memory_space<vmem>>, vector<1x32xf32>,
        %c4_44 = arith.constant 4 : index
        %c0_45 = arith.constant 0 : index
        %85 = vector.load %arg10[%c4_44, %c0_45] : memref<16x128xf32, #tpu.memory_space<vmem>>, vector<1x32xf32>
        tpu.vector_store %arg10[%c4_44, %c0_45], %83 {strides = array<i32>} : memref<16x128xf32, #tpu.memory_space<vmem>>, vector<1x32xf32>,
        %c5_46 = arith.constant 5 : index
        %c0_47 = arith.constant 0 : index
        %86 = vector.load %arg10[%c5_46, %c0_47] : memref<16x128xf32, #tpu.memory_space<vmem>>, vector<1x32xf32>
        tpu.vector_store %arg10[%c5_46, %c0_47], %83 {strides = array<i32>} : memref<16x128xf32, #tpu.memory_space<vmem>>, vector<1x32xf32>,
      } else {
      }
      %c3 = arith.constant 3 : index
      %c0_30 = arith.constant 0 : index
      %63 = vector.load %arg10[%c3, %c0_30] : memref<16x128xf32, #tpu.memory_space<vmem>>, vector<1x32xf32>
      %64 = vector.broadcast %63 : vector<1x32xf32> to vector<16x32xf32>
      %65 = arith.subf %57, %64 : vector<16x32xf32>
      %66 = vector.broadcast %7 : vector<16x1xf32> to vector<16x32xf32>
      %67 = arith.mulf %65, %66 : vector<16x32xf32>
      %c4 = arith.constant 4 : index
      %c0_31 = arith.constant 0 : index
      %68 = vector.load %arg10[%c4, %c0_31] : memref<16x128xf32, #tpu.memory_space<vmem>>, vector<1x32xf32>
      %cst_32 = arith.constant dense<0.000000e+00> : vector<32xf32>
      %69 = vector.multi_reduction <add>, %67, %cst_32 [0] : vector<16x32xf32> to vector<32xf32>
      %70 = vector.shape_cast %69 : vector<32xf32> to vector<1x32xf32>
      %71 = arith.addf %68, %70 : vector<1x32xf32>
      %c4_33 = arith.constant 4 : index
      %c0_34 = arith.constant 0 : index
      %72 = vector.load %arg10[%c4_33, %c0_34] : memref<16x128xf32, #tpu.memory_space<vmem>>, vector<1x32xf32>
      tpu.vector_store %arg10[%c4_33, %c0_34], %71 {strides = array<i32>} : memref<16x128xf32, #tpu.memory_space<vmem>>, vector<1x32xf32>,
      %c5 = arith.constant 5 : index
      %c0_35 = arith.constant 0 : index
      %73 = vector.load %arg10[%c5, %c0_35] : memref<16x128xf32, #tpu.memory_space<vmem>>, vector<1x32xf32>
      %74 = arith.mulf %67, %67 : vector<16x32xf32>
      %cst_36 = arith.constant dense<0.000000e+00> : vector<32xf32>
      %75 = vector.multi_reduction <add>, %74, %cst_36 [0] : vector<16x32xf32> to vector<32xf32>
      %76 = vector.shape_cast %75 : vector<32xf32> to vector<1x32xf32>
      %77 = arith.addf %73, %76 : vector<1x32xf32>
      %c5_37 = arith.constant 5 : index
      %c0_38 = arith.constant 0 : index
      %78 = vector.load %arg10[%c5_37, %c0_38] : memref<16x128xf32, #tpu.memory_space<vmem>>, vector<1x32xf32>
      tpu.vector_store %arg10[%c5_37, %c0_38], %77 {strides = array<i32>} : memref<16x128xf32, #tpu.memory_space<vmem>>, vector<1x32xf32>,
    } else {
    }
    %c2_i32 = arith.constant 2 : i32
    %14 = arith.cmpi eq, %arg0, %c2_i32 : i32
    %15 = arith.extui %14 : i1 to i32
    %c0_i32_2 = arith.constant 0 : i32
    %16 = arith.cmpi ne, %15, %c0_i32_2 : i32
    scf.if %16 {
      %c0 = arith.constant 0 : index
      %c0_4 = arith.constant 0 : index
      %20 = vector.load %arg2[%c0, %c0_4] : memref<16x150xbf16, #tpu.memory_space<vmem>>, vector<16x150xbf16>
      %c0_5 = arith.constant 0 : index
      %c0_6 = arith.constant 0 : index
      %21 = vector.load %arg4[%c0_5, %c0_6] : memref<150x128xbf16, #tpu.memory_space<vmem>>, vector<150x128xbf16>
      %cst = arith.constant dense<0.000000e+00> : vector<16x128xf32>
      %22 = tpu.matmul %20, %21, %cst {dimension_numbers = #tpu.dot_dimension_numbers<[1], [0], [0], [1], [0, 0, 1, 1], [], []>} : vector<16x150xbf16>, vector<150x128xbf16>, vector<16x128xf32> -> vector<16x128xf32>
      %c0_7 = arith.constant 0 : index
      %c0_8 = arith.constant 0 : index
      %23 = vector.load %arg3[%c0_7, %c0_8] : memref<16x10xbf16, #tpu.memory_space<vmem>>, vector<16x10xbf16>
      %c0_9 = arith.constant 0 : index
      %c0_10 = arith.constant 0 : index
      %24 = vector.load %arg5[%c0_9, %c0_10] : memref<10x128xbf16, #tpu.memory_space<vmem>>, vector<10x128xbf16>
      %cst_11 = arith.constant dense<0.000000e+00> : vector<16x128xf32>
      %25 = tpu.matmul %23, %24, %cst_11 {dimension_numbers = #tpu.dot_dimension_numbers<[1], [0], [0], [1], [0, 0, 1, 1], [], []>} : vector<16x10xbf16>, vector<10x128xbf16>, vector<16x128xf32> -> vector<16x128xf32>
      %26 = arith.addf %22, %25 : vector<16x128xf32>
      %c0_12 = arith.constant 0 : index
      %c0_13 = arith.constant 0 : index
      %27 = vector.load %arg10[%c0_12, %c0_13] : memref<16x128xf32, #tpu.memory_space<vmem>>, vector<1x128xf32>
      %c1 = arith.constant 1 : index
      %c0_14 = arith.constant 0 : index
      %28 = vector.load %arg10[%c1, %c0_14] : memref<16x128xf32, #tpu.memory_space<vmem>>, vector<1x128xf32>
      %cst_15 = arith.constant 1.250000e-01 : f32
      %29 = vector.broadcast %cst_15 : f32 to vector<1x128xf32>
      %30 = arith.mulf %28, %29 : vector<1x128xf32>
      %c2 = arith.constant 2 : index
      %c0_16 = arith.constant 0 : index
      %31 = vector.load %arg10[%c2, %c0_16] : memref<16x128xf32, #tpu.memory_space<vmem>>, vector<1x128xf32>
      %cst_17 = arith.constant 1.250000e-01 : f32
      %32 = vector.broadcast %cst_17 : f32 to vector<1x128xf32>
      %33 = arith.mulf %31, %32 : vector<1x128xf32>
      %34 = arith.mulf %30, %30 : vector<1x128xf32>
      %35 = arith.subf %33, %34 : vector<1x128xf32>
      %c0_18 = arith.constant 0 : index
      %c0_19 = arith.constant 0 : index
      %36 = vector.load %arg8[%c0_18, %c0_19] : memref<8x128xf32, #tpu.memory_space<vmem>>, vector<1x128xf32>
      %c1_20 = arith.constant 1 : index
      %c0_21 = arith.constant 0 : index
      %37 = vector.load %arg8[%c1_20, %c0_21] : memref<8x128xf32, #tpu.memory_space<vmem>>, vector<1x128xf32>
      %38 = arith.addf %27, %30 : vector<1x128xf32>
      %39 = vector.broadcast %38 : vector<1x128xf32> to vector<16x128xf32>
      %40 = arith.subf %26, %39 : vector<16x128xf32>
      %cst_22 = arith.constant 9.99999974E-6 : f32
      %41 = vector.broadcast %cst_22 : f32 to vector<1x128xf32>
      %42 = arith.addf %35, %41 : vector<1x128xf32>
      %43 = math.rsqrt %42 : vector<1x128xf32>
      %44 = vector.broadcast %43 : vector<1x128xf32> to vector<16x128xf32>
      %45 = arith.mulf %40, %44 : vector<16x128xf32>
      %46 = vector.broadcast %36 : vector<1x128xf32> to vector<16x128xf32>
      %47 = arith.mulf %45, %46 : vector<16x128xf32>
      %48 = vector.broadcast %37 : vector<1x128xf32> to vector<16x128xf32>
      %49 = arith.addf %47, %48 : vector<16x128xf32>
      %cst_23 = arith.constant 0.000000e+00 : f32
      %50 = vector.broadcast %cst_23 : f32 to vector<16x128xf32>
      %51 = arith.cmpf oge, %49, %50 : vector<16x128xf32>
      %cst_24 = arith.constant 0.00999999977 : f32
      %52 = vector.broadcast %cst_24 : f32 to vector<16x128xf32>
      %53 = arith.mulf %52, %49 : vector<16x128xf32>
      %54 = arith.select %51, %49, %53 : vector<16x128xi1>, vector<16x128xf32>
      %55 = arith.truncf %54 : vector<16x128xf32> to vector<16x128xbf16>
      %c0_25 = arith.constant 0 : index
      %c0_26 = arith.constant 0 : index
      %56 = vector.load %arg6[%c0_25, %c0_26] : memref<128x32xbf16, #tpu.memory_space<vmem>>, vector<128x32xbf16>
      %cst_27 = arith.constant dense<0.000000e+00> : vector<16x32xf32>
      %57 = tpu.matmul %55, %56, %cst_27 {dimension_numbers = #tpu.dot_dimension_numbers<[1], [0], [0], [1], [0, 0, 1, 1], [], []>} : vector<16x128xbf16>, vector<128x32xbf16>, vector<16x32xf32> -> vector<16x32xf32>
      %c3 = arith.constant 3 : index
      %c0_28 = arith.constant 0 : index
      %58 = vector.load %arg10[%c3, %c0_28] : memref<16x128xf32, #tpu.memory_space<vmem>>, vector<1x32xf32>
      %c4 = arith.constant 4 : index
      %c0_29 = arith.constant 0 : index
      %59 = vector.load %arg10[%c4, %c0_29] : memref<16x128xf32, #tpu.memory_space<vmem>>, vector<1x32xf32>
      %cst_30 = arith.constant 1.250000e-01 : f32
      %60 = vector.broadcast %cst_30 : f32 to vector<1x32xf32>
      %61 = arith.mulf %59, %60 : vector<1x32xf32>
      %c5 = arith.constant 5 : index
      %c0_31 = arith.constant 0 : index
      %62 = vector.load %arg10[%c5, %c0_31] : memref<16x128xf32, #tpu.memory_space<vmem>>, vector<1x32xf32>
      %cst_32 = arith.constant 1.250000e-01 : f32
      %63 = vector.broadcast %cst_32 : f32 to vector<1x32xf32>
      %64 = arith.mulf %62, %63 : vector<1x32xf32>
      %65 = arith.mulf %61, %61 : vector<1x32xf32>
      %66 = arith.subf %64, %65 : vector<1x32xf32>
      %c2_33 = arith.constant 2 : index
      %c0_34 = arith.constant 0 : index
      %67 = vector.load %arg8[%c2_33, %c0_34] : memref<8x128xf32, #tpu.memory_space<vmem>>, vector<1x32xf32>
      %c3_35 = arith.constant 3 : index
      %c0_36 = arith.constant 0 : index
      %68 = vector.load %arg8[%c3_35, %c0_36] : memref<8x128xf32, #tpu.memory_space<vmem>>, vector<1x32xf32>
      %69 = arith.addf %58, %61 : vector<1x32xf32>
      %70 = vector.broadcast %69 : vector<1x32xf32> to vector<16x32xf32>
      %71 = arith.subf %57, %70 : vector<16x32xf32>
      %cst_37 = arith.constant 9.99999974E-6 : f32
      %72 = vector.broadcast %cst_37 : f32 to vector<1x32xf32>
      %73 = arith.addf %66, %72 : vector<1x32xf32>
      %74 = math.rsqrt %73 : vector<1x32xf32>
      %75 = vector.broadcast %74 : vector<1x32xf32> to vector<16x32xf32>
      %76 = arith.mulf %71, %75 : vector<16x32xf32>
      %77 = vector.broadcast %67 : vector<1x32xf32> to vector<16x32xf32>
      %78 = arith.mulf %76, %77 : vector<16x32xf32>
      %79 = vector.broadcast %68 : vector<1x32xf32> to vector<16x32xf32>
      %80 = arith.addf %78, %79 : vector<16x32xf32>
      %cst_38 = arith.constant 0.000000e+00 : f32
      %81 = vector.broadcast %cst_38 : f32 to vector<16x32xf32>
      %82 = arith.cmpf oge, %80, %81 : vector<16x32xf32>
      %cst_39 = arith.constant 0.00999999977 : f32
      %83 = vector.broadcast %cst_39 : f32 to vector<16x32xf32>
      %84 = arith.mulf %83, %80 : vector<16x32xf32>
      %85 = arith.select %82, %80, %84 : vector<16x32xi1>, vector<16x32xf32>
      %cst_40 = arith.constant dense<0.000000e+00> : vector<16xf32>
      %86 = vector.multi_reduction <add>, %85, %cst_40 [1] : vector<16x32xf32> to vector<16xf32>
      %87 = vector.shape_cast %86 : vector<16xf32> to vector<16x1xf32>
      %cst_41 = arith.constant 3.200000e+01 : f32
      %88 = vector.broadcast %cst_41 : f32 to vector<16x1xf32>
      %89 = arith.divf %87, %88 : vector<16x1xf32>
      %90 = vector.broadcast %89 : vector<16x1xf32> to vector<16x32xf32>
      %91 = arith.subf %85, %90 : vector<16x32xf32>
      %92 = arith.mulf %91, %91 : vector<16x32xf32>
      %cst_42 = arith.constant dense<0.000000e+00> : vector<16xf32>
      %93 = vector.multi_reduction <add>, %92, %cst_42 [1] : vector<16x32xf32> to vector<16xf32>
      %94 = vector.shape_cast %93 : vector<16xf32> to vector<16x1xf32>
      %cst_43 = arith.constant 3.200000e+01 : f32
      %95 = vector.broadcast %cst_43 : f32 to vector<16x1xf32>
      %96 = arith.divf %94, %95 : vector<16x1xf32>
      %cst_44 = arith.constant 9.99999974E-6 : f32
      %97 = vector.broadcast %cst_44 : f32 to vector<16x1xf32>
      %98 = arith.addf %96, %97 : vector<16x1xf32>
      %99 = math.rsqrt %98 : vector<16x1xf32>
      %100 = vector.broadcast %99 : vector<16x1xf32> to vector<16x32xf32>
      %101 = arith.mulf %91, %100 : vector<16x32xf32>
      %c4_45 = arith.constant 4 : index
      %c0_46 = arith.constant 0 : index
      %102 = vector.load %arg8[%c4_45, %c0_46] : memref<8x128xf32, #tpu.memory_space<vmem>>, vector<1x32xf32>
      %103 = vector.broadcast %102 : vector<1x32xf32> to vector<16x32xf32>
      %104 = arith.mulf %101, %103 : vector<16x32xf32>
      %c5_47 = arith.constant 5 : index
      %c0_48 = arith.constant 0 : index
      %105 = vector.load %arg8[%c5_47, %c0_48] : memref<8x128xf32, #tpu.memory_space<vmem>>, vector<1x32xf32>
      %106 = vector.broadcast %105 : vector<1x32xf32> to vector<16x32xf32>
      %107 = arith.addf %104, %106 : vector<16x32xf32>
      %108 = arith.truncf %107 : vector<16x32xf32> to vector<16x32xbf16>
      %c0_49 = arith.constant 0 : index
      %c0_50 = arith.constant 0 : index
      %109 = vector.load %arg7[%c0_49, %c0_50] : memref<32x64xbf16, #tpu.memory_space<vmem>>, vector<32x64xbf16>
      %cst_51 = arith.constant dense<0.000000e+00> : vector<16x64xf32>
      %110 = tpu.matmul %108, %109, %cst_51 {dimension_numbers = #tpu.dot_dimension_numbers<[1], [0], [0], [1], [0, 0, 1, 1], [], []>} : vector<16x32xbf16>, vector<32x64xbf16>, vector<16x64xf32> -> vector<16x64xf32>
      %111 = vector.broadcast %7 : vector<16x1xf32> to vector<16x64xf32>
      %112 = arith.mulf %110, %111 : vector<16x64xf32>
      %c0_i32_52 = arith.constant 0 : i32
      %113 = arith.cmpi eq, %arg1, %c0_i32_52 : i32
      %114 = arith.extui %113 : i1 to i32
      %c0_i32_53 = arith.constant 0 : i32
      %115 = arith.cmpi ne, %114, %c0_i32_53 : i32
      scf.if %115 {
        %cst_63 = arith.constant dense<0.000000e+00> : vector<64xf32>
        %132 = vector.multi_reduction <add>, %112, %cst_63 [0] : vector<16x64xf32> to vector<64xf32>
        %133 = vector.shape_cast %132 : vector<64xf32> to vector<1x64xf32>
        %cst_64 = arith.constant 1.250000e-01 : f32
        %134 = vector.broadcast %cst_64 : f32 to vector<1x64xf32>
        %135 = arith.mulf %133, %134 : vector<1x64xf32>
        %cst_65 = arith.constant 0.000000e+00 : f32
        %136 = vector.broadcast %cst_65 : f32 to vector<1x64xf32>
        %c6_66 = arith.constant 6 : index
        %c0_67 = arith.constant 0 : index
        %137 = vector.load %arg10[%c6_66, %c0_67] : memref<16x128xf32, #tpu.memory_space<vmem>>, vector<1x64xf32>
        tpu.vector_store %arg10[%c6_66, %c0_67], %135 {strides = array<i32>} : memref<16x128xf32, #tpu.memory_space<vmem>>, vector<1x64xf32>,
        %c7_68 = arith.constant 7 : index
        %c0_69 = arith.constant 0 : index
        %138 = vector.load %arg10[%c7_68, %c0_69] : memref<16x128xf32, #tpu.memory_space<vmem>>, vector<1x64xf32>
        tpu.vector_store %arg10[%c7_68, %c0_69], %136 {strides = array<i32>} : memref<16x128xf32, #tpu.memory_space<vmem>>, vector<1x64xf32>,
        %c8_70 = arith.constant 8 : index
        %c0_71 = arith.constant 0 : index
        %139 = vector.load %arg10[%c8_70, %c0_71] : memref<16x128xf32, #tpu.memory_space<vmem>>, vector<1x64xf32>
        tpu.vector_store %arg10[%c8_70, %c0_71], %136 {strides = array<i32>} : memref<16x128xf32, #tpu.memory_space<vmem>>, vector<1x64xf32>,
      } else {
      }
      %c6 = arith.constant 6 : index
      %c0_54 = arith.constant 0 : index
      %116 = vector.load %arg10[%c6, %c0_54] : memref<16x128xf32, #tpu.memory_space<vmem>>, vector<1x64xf32>
      %117 = vector.broadcast %116 : vector<1x64xf32> to vector<16x64xf32>
      %118 = arith.subf %110, %117 : vector<16x64xf32>
      %119 = vector.broadcast %7 : vector<16x1xf32> to vector<16x64xf32>
      %120 = arith.mulf %118, %119 : vector<16x64xf32>
      %c7 = arith.constant 7 : index
      %c0_55 = arith.constant 0 : index
      %121 = vector.load %arg10[%c7, %c0_55] : memref<16x128xf32, #tpu.memory_space<vmem>>, vector<1x64xf32>
      %cst_56 = arith.constant dense<0.000000e+00> : vector<64xf32>
      %122 = vector.multi_reduction <add>, %120, %cst_56 [0] : vector<16x64xf32> to vector<64xf32>
      %123 = vector.shape_cast %122 : vector<64xf32> to vector<1x64xf32>
      %124 = arith.addf %121, %123 : vector<1x64xf32>
      %c7_57 = arith.constant 7 : index
      %c0_58 = arith.constant 0 : index
      %125 = vector.load %arg10[%c7_57, %c0_58] : memref<16x128xf32, #tpu.memory_space<vmem>>, vector<1x64xf32>
      tpu.vector_store %arg10[%c7_57, %c0_58], %124 {strides = array<i32>} : memref<16x128xf32, #tpu.memory_space<vmem>>, vector<1x64xf32>,
      %c8 = arith.constant 8 : index
      %c0_59 = arith.constant 0 : index
      %126 = vector.load %arg10[%c8, %c0_59] : memref<16x128xf32, #tpu.memory_space<vmem>>, vector<1x64xf32>
      %127 = arith.mulf %120, %120 : vector<16x64xf32>
      %cst_60 = arith.constant dense<0.000000e+00> : vector<64xf32>
      %128 = vector.multi_reduction <add>, %127, %cst_60 [0] : vector<16x64xf32> to vector<64xf32>
      %129 = vector.shape_cast %128 : vector<64xf32> to vector<1x64xf32>
      %130 = arith.addf %126, %129 : vector<1x64xf32>
      %c8_61 = arith.constant 8 : index
      %c0_62 = arith.constant 0 : index
      %131 = vector.load %arg10[%c8_61, %c0_62] : memref<16x128xf32, #tpu.memory_space<vmem>>, vector<1x64xf32>
      tpu.vector_store %arg10[%c8_61, %c0_62], %130 {strides = array<i32>} : memref<16x128xf32, #tpu.memory_space<vmem>>, vector<1x64xf32>,
    } else {
    }
    %c3_i32 = arith.constant 3 : i32
    %17 = arith.cmpi eq, %arg0, %c3_i32 : i32
    %18 = arith.extui %17 : i1 to i32
    %c0_i32_3 = arith.constant 0 : i32
    %19 = arith.cmpi ne, %18, %c0_i32_3 : i32
    scf.if %19 {
      %c0 = arith.constant 0 : index
      %c0_4 = arith.constant 0 : index
      %20 = vector.load %arg2[%c0, %c0_4] : memref<16x150xbf16, #tpu.memory_space<vmem>>, vector<16x150xbf16>
      %c0_5 = arith.constant 0 : index
      %c0_6 = arith.constant 0 : index
      %21 = vector.load %arg4[%c0_5, %c0_6] : memref<150x128xbf16, #tpu.memory_space<vmem>>, vector<150x128xbf16>
      %cst = arith.constant dense<0.000000e+00> : vector<16x128xf32>
      %22 = tpu.matmul %20, %21, %cst {dimension_numbers = #tpu.dot_dimension_numbers<[1], [0], [0], [1], [0, 0, 1, 1], [], []>} : vector<16x150xbf16>, vector<150x128xbf16>, vector<16x128xf32> -> vector<16x128xf32>
      %c0_7 = arith.constant 0 : index
      %c0_8 = arith.constant 0 : index
      %23 = vector.load %arg3[%c0_7, %c0_8] : memref<16x10xbf16, #tpu.memory_space<vmem>>, vector<16x10xbf16>
      %c0_9 = arith.constant 0 : index
      %c0_10 = arith.constant 0 : index
      %24 = vector.load %arg5[%c0_9, %c0_10] : memref<10x128xbf16, #tpu.memory_space<vmem>>, vector<10x128xbf16>
      %cst_11 = arith.constant dense<0.000000e+00> : vector<16x128xf32>
      %25 = tpu.matmul %23, %24, %cst_11 {dimension_numbers = #tpu.dot_dimension_numbers<[1], [0], [0], [1], [0, 0, 1, 1], [], []>} : vector<16x10xbf16>, vector<10x128xbf16>, vector<16x128xf32> -> vector<16x128xf32>
      %26 = arith.addf %22, %25 : vector<16x128xf32>
      %c0_12 = arith.constant 0 : index
      %c0_13 = arith.constant 0 : index
      %27 = vector.load %arg10[%c0_12, %c0_13] : memref<16x128xf32, #tpu.memory_space<vmem>>, vector<1x128xf32>
      %c1 = arith.constant 1 : index
      %c0_14 = arith.constant 0 : index
      %28 = vector.load %arg10[%c1, %c0_14] : memref<16x128xf32, #tpu.memory_space<vmem>>, vector<1x128xf32>
      %cst_15 = arith.constant 1.250000e-01 : f32
      %29 = vector.broadcast %cst_15 : f32 to vector<1x128xf32>
      %30 = arith.mulf %28, %29 : vector<1x128xf32>
      %c2 = arith.constant 2 : index
      %c0_16 = arith.constant 0 : index
      %31 = vector.load %arg10[%c2, %c0_16] : memref<16x128xf32, #tpu.memory_space<vmem>>, vector<1x128xf32>
      %cst_17 = arith.constant 1.250000e-01 : f32
      %32 = vector.broadcast %cst_17 : f32 to vector<1x128xf32>
      %33 = arith.mulf %31, %32 : vector<1x128xf32>
      %34 = arith.mulf %30, %30 : vector<1x128xf32>
      %35 = arith.subf %33, %34 : vector<1x128xf32>
      %c0_18 = arith.constant 0 : index
      %c0_19 = arith.constant 0 : index
      %36 = vector.load %arg8[%c0_18, %c0_19] : memref<8x128xf32, #tpu.memory_space<vmem>>, vector<1x128xf32>
      %c1_20 = arith.constant 1 : index
      %c0_21 = arith.constant 0 : index
      %37 = vector.load %arg8[%c1_20, %c0_21] : memref<8x128xf32, #tpu.memory_space<vmem>>, vector<1x128xf32>
      %38 = arith.addf %27, %30 : vector<1x128xf32>
      %39 = vector.broadcast %38 : vector<1x128xf32> to vector<16x128xf32>
      %40 = arith.subf %26, %39 : vector<16x128xf32>
      %cst_22 = arith.constant 9.99999974E-6 : f32
      %41 = vector.broadcast %cst_22 : f32 to vector<1x128xf32>
      %42 = arith.addf %35, %41 : vector<1x128xf32>
      %43 = math.rsqrt %42 : vector<1x128xf32>
      %44 = vector.broadcast %43 : vector<1x128xf32> to vector<16x128xf32>
      %45 = arith.mulf %40, %44 : vector<16x128xf32>
      %46 = vector.broadcast %36 : vector<1x128xf32> to vector<16x128xf32>
      %47 = arith.mulf %45, %46 : vector<16x128xf32>
      %48 = vector.broadcast %37 : vector<1x128xf32> to vector<16x128xf32>
      %49 = arith.addf %47, %48 : vector<16x128xf32>
      %cst_23 = arith.constant 0.000000e+00 : f32
      %50 = vector.broadcast %cst_23 : f32 to vector<16x128xf32>
      %51 = arith.cmpf oge, %49, %50 : vector<16x128xf32>
      %cst_24 = arith.constant 0.00999999977 : f32
      %52 = vector.broadcast %cst_24 : f32 to vector<16x128xf32>
      %53 = arith.mulf %52, %49 : vector<16x128xf32>
      %54 = arith.select %51, %49, %53 : vector<16x128xi1>, vector<16x128xf32>
      %55 = arith.truncf %54 : vector<16x128xf32> to vector<16x128xbf16>
      %c0_25 = arith.constant 0 : index
      %c0_26 = arith.constant 0 : index
      %56 = vector.load %arg6[%c0_25, %c0_26] : memref<128x32xbf16, #tpu.memory_space<vmem>>, vector<128x32xbf16>
      %cst_27 = arith.constant dense<0.000000e+00> : vector<16x32xf32>
      %57 = tpu.matmul %55, %56, %cst_27 {dimension_numbers = #tpu.dot_dimension_numbers<[1], [0], [0], [1], [0, 0, 1, 1], [], []>} : vector<16x128xbf16>, vector<128x32xbf16>, vector<16x32xf32> -> vector<16x32xf32>
      %c3 = arith.constant 3 : index
      %c0_28 = arith.constant 0 : index
      %58 = vector.load %arg10[%c3, %c0_28] : memref<16x128xf32, #tpu.memory_space<vmem>>, vector<1x32xf32>
      %c4 = arith.constant 4 : index
      %c0_29 = arith.constant 0 : index
      %59 = vector.load %arg10[%c4, %c0_29] : memref<16x128xf32, #tpu.memory_space<vmem>>, vector<1x32xf32>
      %cst_30 = arith.constant 1.250000e-01 : f32
      %60 = vector.broadcast %cst_30 : f32 to vector<1x32xf32>
      %61 = arith.mulf %59, %60 : vector<1x32xf32>
      %c5 = arith.constant 5 : index
      %c0_31 = arith.constant 0 : index
      %62 = vector.load %arg10[%c5, %c0_31] : memref<16x128xf32, #tpu.memory_space<vmem>>, vector<1x32xf32>
      %cst_32 = arith.constant 1.250000e-01 : f32
      %63 = vector.broadcast %cst_32 : f32 to vector<1x32xf32>
      %64 = arith.mulf %62, %63 : vector<1x32xf32>
      %65 = arith.mulf %61, %61 : vector<1x32xf32>
      %66 = arith.subf %64, %65 : vector<1x32xf32>
      %c2_33 = arith.constant 2 : index
      %c0_34 = arith.constant 0 : index
      %67 = vector.load %arg8[%c2_33, %c0_34] : memref<8x128xf32, #tpu.memory_space<vmem>>, vector<1x32xf32>
      %c3_35 = arith.constant 3 : index
      %c0_36 = arith.constant 0 : index
      %68 = vector.load %arg8[%c3_35, %c0_36] : memref<8x128xf32, #tpu.memory_space<vmem>>, vector<1x32xf32>
      %69 = arith.addf %58, %61 : vector<1x32xf32>
      %70 = vector.broadcast %69 : vector<1x32xf32> to vector<16x32xf32>
      %71 = arith.subf %57, %70 : vector<16x32xf32>
      %cst_37 = arith.constant 9.99999974E-6 : f32
      %72 = vector.broadcast %cst_37 : f32 to vector<1x32xf32>
      %73 = arith.addf %66, %72 : vector<1x32xf32>
      %74 = math.rsqrt %73 : vector<1x32xf32>
      %75 = vector.broadcast %74 : vector<1x32xf32> to vector<16x32xf32>
      %76 = arith.mulf %71, %75 : vector<16x32xf32>
      %77 = vector.broadcast %67 : vector<1x32xf32> to vector<16x32xf32>
      %78 = arith.mulf %76, %77 : vector<16x32xf32>
      %79 = vector.broadcast %68 : vector<1x32xf32> to vector<16x32xf32>
      %80 = arith.addf %78, %79 : vector<16x32xf32>
      %cst_38 = arith.constant 0.000000e+00 : f32
      %81 = vector.broadcast %cst_38 : f32 to vector<16x32xf32>
      %82 = arith.cmpf oge, %80, %81 : vector<16x32xf32>
      %cst_39 = arith.constant 0.00999999977 : f32
      %83 = vector.broadcast %cst_39 : f32 to vector<16x32xf32>
      %84 = arith.mulf %83, %80 : vector<16x32xf32>
      %85 = arith.select %82, %80, %84 : vector<16x32xi1>, vector<16x32xf32>
      %cst_40 = arith.constant dense<0.000000e+00> : vector<16xf32>
      %86 = vector.multi_reduction <add>, %85, %cst_40 [1] : vector<16x32xf32> to vector<16xf32>
      %87 = vector.shape_cast %86 : vector<16xf32> to vector<16x1xf32>
      %cst_41 = arith.constant 3.200000e+01 : f32
      %88 = vector.broadcast %cst_41 : f32 to vector<16x1xf32>
      %89 = arith.divf %87, %88 : vector<16x1xf32>
      %90 = vector.broadcast %89 : vector<16x1xf32> to vector<16x32xf32>
      %91 = arith.subf %85, %90 : vector<16x32xf32>
      %92 = arith.mulf %91, %91 : vector<16x32xf32>
      %cst_42 = arith.constant dense<0.000000e+00> : vector<16xf32>
      %93 = vector.multi_reduction <add>, %92, %cst_42 [1] : vector<16x32xf32> to vector<16xf32>
      %94 = vector.shape_cast %93 : vector<16xf32> to vector<16x1xf32>
      %cst_43 = arith.constant 3.200000e+01 : f32
      %95 = vector.broadcast %cst_43 : f32 to vector<16x1xf32>
      %96 = arith.divf %94, %95 : vector<16x1xf32>
      %cst_44 = arith.constant 9.99999974E-6 : f32
      %97 = vector.broadcast %cst_44 : f32 to vector<16x1xf32>
      %98 = arith.addf %96, %97 : vector<16x1xf32>
      %99 = math.rsqrt %98 : vector<16x1xf32>
      %100 = vector.broadcast %99 : vector<16x1xf32> to vector<16x32xf32>
      %101 = arith.mulf %91, %100 : vector<16x32xf32>
      %c4_45 = arith.constant 4 : index
      %c0_46 = arith.constant 0 : index
      %102 = vector.load %arg8[%c4_45, %c0_46] : memref<8x128xf32, #tpu.memory_space<vmem>>, vector<1x32xf32>
      %103 = vector.broadcast %102 : vector<1x32xf32> to vector<16x32xf32>
      %104 = arith.mulf %101, %103 : vector<16x32xf32>
      %c5_47 = arith.constant 5 : index
      %c0_48 = arith.constant 0 : index
      %105 = vector.load %arg8[%c5_47, %c0_48] : memref<8x128xf32, #tpu.memory_space<vmem>>, vector<1x32xf32>
      %106 = vector.broadcast %105 : vector<1x32xf32> to vector<16x32xf32>
      %107 = arith.addf %104, %106 : vector<16x32xf32>
      %108 = arith.truncf %107 : vector<16x32xf32> to vector<16x32xbf16>
      %c0_49 = arith.constant 0 : index
      %c0_50 = arith.constant 0 : index
      %109 = vector.load %arg7[%c0_49, %c0_50] : memref<32x64xbf16, #tpu.memory_space<vmem>>, vector<32x64xbf16>
      %cst_51 = arith.constant dense<0.000000e+00> : vector<16x64xf32>
      %110 = tpu.matmul %108, %109, %cst_51 {dimension_numbers = #tpu.dot_dimension_numbers<[1], [0], [0], [1], [0, 0, 1, 1], [], []>} : vector<16x32xbf16>, vector<32x64xbf16>, vector<16x64xf32> -> vector<16x64xf32>
      %c6 = arith.constant 6 : index
      %c0_52 = arith.constant 0 : index
      %111 = vector.load %arg10[%c6, %c0_52] : memref<16x128xf32, #tpu.memory_space<vmem>>, vector<1x64xf32>
      %c7 = arith.constant 7 : index
      %c0_53 = arith.constant 0 : index
      %112 = vector.load %arg10[%c7, %c0_53] : memref<16x128xf32, #tpu.memory_space<vmem>>, vector<1x64xf32>
      %cst_54 = arith.constant 1.250000e-01 : f32
      %113 = vector.broadcast %cst_54 : f32 to vector<1x64xf32>
      %114 = arith.mulf %112, %113 : vector<1x64xf32>
      %c8 = arith.constant 8 : index
      %c0_55 = arith.constant 0 : index
      %115 = vector.load %arg10[%c8, %c0_55] : memref<16x128xf32, #tpu.memory_space<vmem>>, vector<1x64xf32>
      %cst_56 = arith.constant 1.250000e-01 : f32
      %116 = vector.broadcast %cst_56 : f32 to vector<1x64xf32>
      %117 = arith.mulf %115, %116 : vector<1x64xf32>
      %118 = arith.mulf %114, %114 : vector<1x64xf32>
      %119 = arith.subf %117, %118 : vector<1x64xf32>
      %c6_57 = arith.constant 6 : index
      %c0_58 = arith.constant 0 : index
      %120 = vector.load %arg8[%c6_57, %c0_58] : memref<8x128xf32, #tpu.memory_space<vmem>>, vector<1x64xf32>
      %c7_59 = arith.constant 7 : index
      %c0_60 = arith.constant 0 : index
      %121 = vector.load %arg8[%c7_59, %c0_60] : memref<8x128xf32, #tpu.memory_space<vmem>>, vector<1x64xf32>
      %122 = arith.addf %111, %114 : vector<1x64xf32>
      %123 = vector.broadcast %122 : vector<1x64xf32> to vector<16x64xf32>
      %124 = arith.subf %110, %123 : vector<16x64xf32>
      %cst_61 = arith.constant 9.99999974E-6 : f32
      %125 = vector.broadcast %cst_61 : f32 to vector<1x64xf32>
      %126 = arith.addf %119, %125 : vector<1x64xf32>
      %127 = math.rsqrt %126 : vector<1x64xf32>
      %128 = vector.broadcast %127 : vector<1x64xf32> to vector<16x64xf32>
      %129 = arith.mulf %124, %128 : vector<16x64xf32>
      %130 = vector.broadcast %120 : vector<1x64xf32> to vector<16x64xf32>
      %131 = arith.mulf %129, %130 : vector<16x64xf32>
      %132 = vector.broadcast %121 : vector<1x64xf32> to vector<16x64xf32>
      %133 = arith.addf %131, %132 : vector<16x64xf32>
      %134 = vector.extract_strided_slice %133 {offsets = [0, 0], sizes = [8, 64], strides = [1, 1]} : vector<16x64xf32> to vector<8x64xf32>
      %135 = vector.extract_strided_slice %133 {offsets = [8, 0], sizes = [8, 64], strides = [1, 1]} : vector<16x64xf32> to vector<8x64xf32>
      %136 = tpu.concatenate %134, %135 in 1 : vector<8x64xf32>, vector<8x64xf32> -> vector<8x128xf32>
      %c0_62 = arith.constant 0 : index
      %c0_63 = arith.constant 0 : index
      %137 = vector.load %arg9[%c0_62, %c0_63] : memref<8x128xf32, #tpu.memory_space<vmem>>, vector<8x128xf32>
      tpu.vector_store %arg9[%c0_62, %c0_63], %136 {strides = array<i32>} : memref<8x128xf32, #tpu.memory_space<vmem>>, vector<8x128xf32>,
    } else {
    }
    return
  }
  func.func @transform_0(%arg0: i32, %arg1: i32) -> (i32, i32) {
    %c0_i32 = arith.constant 0 : i32
    %c0_i32_0 = arith.constant 0 : i32
    return %arg1, %c0_i32 : i32, i32
  }
  func.func @transform_1(%arg0: i32, %arg1: i32) -> (i32, i32) {
    %c0_i32 = arith.constant 0 : i32
    %c0_i32_0 = arith.constant 0 : i32
    return %arg1, %c0_i32 : i32, i32
  }
  func.func @transform_2(%arg0: i32, %arg1: i32) -> (i32, i32) {
    %c0_i32 = arith.constant 0 : i32
    %c0_i32_0 = arith.constant 0 : i32
    %c0_i32_1 = arith.constant 0 : i32
    return %c0_i32, %c0_i32_0 : i32, i32
  }
  func.func @transform_3(%arg0: i32, %arg1: i32) -> (i32, i32) {
    %c0_i32 = arith.constant 0 : i32
    %c0_i32_0 = arith.constant 0 : i32
    %c0_i32_1 = arith.constant 0 : i32
    return %c0_i32, %c0_i32_0 : i32, i32
  }
  func.func @transform_4(%arg0: i32, %arg1: i32) -> (i32, i32) {
    %c0_i32 = arith.constant 0 : i32
    %c0_i32_0 = arith.constant 0 : i32
    %c0_i32_1 = arith.constant 0 : i32
    return %c0_i32, %c0_i32_0 : i32, i32
  }
  func.func @transform_5(%arg0: i32, %arg1: i32) -> (i32, i32) {
    %c0_i32 = arith.constant 0 : i32
    %c0_i32_0 = arith.constant 0 : i32
    %c0_i32_1 = arith.constant 0 : i32
    return %c0_i32, %c0_i32_0 : i32, i32
  }
  func.func @transform_6(%arg0: i32, %arg1: i32) -> (i32, i32) {
    %c0_i32 = arith.constant 0 : i32
    %c0_i32_0 = arith.constant 0 : i32
    %c0_i32_1 = arith.constant 0 : i32
    return %c0_i32, %c0_i32_0 : i32, i32
  }
  func.func @transform_7(%arg0: i32, %arg1: i32) -> (i32, i32) {
    %c3_i32 = arith.constant 3 : i32
    %0 = arith.cmpi eq, %arg0, %c3_i32 : i32
    %c0_i32 = arith.constant 0 : i32
    %1 = arith.select %0, %arg1, %c0_i32 : i32
    %c0_i32_0 = arith.constant 0 : i32
    %c0_i32_1 = arith.constant 0 : i32
    return %1, %c0_i32_0 : i32, i32
  }
}

</mosaic_0001>

<bundles_post_ra>
// kernel: teamwork_situation_encoder.1
= control target key start
LH: loop header
LB: loop body
LE: loop exit
PB: predicated region body
PF: predicated region fallthrough
CT: control target
= control target key end

     0   :  { %s2681_s24 = smov 0   ;;  %s2683_s25 = smov 0   ;;  %s3108_s0 = inlined_call_operand.vmem [shape: bf16[16,150], index: 0, kind: input, shape index: {}]   ;;  %s3109_s1 = inlined_call_operand.vmem [shape: bf16[16,10], index: 1, kind: input, shape index: {}]   ;;  %s3110_s2 = inlined_call_operand.vmem [shape: bf16[150,128], index: 2, kind: input, shape index: {}]   ;;  %s3111_s3 = inlined_call_operand.vmem [shape: bf16[10,128], index: 3, kind: input, shape index: {}]   ;;  %s3112_s4 = inlined_call_operand.vmem [shape: bf16[128,32], index: 4, kind: input, shape index: {}]   ;;  %s3113_s5 = inlined_call_operand.vmem [shape: bf16[32,64], index: 5, kind: input, shape index: {}]   ;;  %s3114_s6 = inlined_call_operand.vmem [shape: f32[8,128], index: 6, kind: input, shape index: {}]   ;;  %s3115_s7 = inlined_call_operand.vmem [shape: f32[8,128], index: 7, kind: output, shape index: {}]  }
   0x1   :  { %s2685_s26 = smov 0  }
   0x2 LB: > { %s29_s27 = sadd.s32 1, %s2622_s25  ;;  %p2184_p0 = scmp.ge.s32.totalorder %s2626_s26, 1  ;;  %s2626_s26 = sphi %s2685_s26, %s17_s26   ;;  %s2622_s25 = sphi %s2683_s25, %s3117_s25   ;;  %s2618_s24 = sphi %s2681_s24, %s3116_s24  }
   0x3   : > { %p31_p1 = scmp.ge.s32.totalorder %s29_s27, 4  ;;  %p266_p2 = scmp.lt.s32.totalorder %s2626_s26, 5 }
   0x5   : > { %s3119_s27 = smov (%p31_p1, %s29_s27), 0  ;;  %p267_p3 = pnand %p2184_p0, %p266_p2 }
   0x6   : > { %p2185_p4 = scmp.ne.s32.totalorder (!%p267_p3), %s2618_s24, 0 }
   0x7   : > { %270 = sbr.rel (%p267_p3) target bundleno = 3092 (0xc14), region = 48 }
   0xe   : > { %343 = sbr.rel (%p2185_p4) target bundleno = 320 (0x140), region = 52  ;;  %v2496_v0 = vld [vmem:[%s3110_s2] sm:$0xff] (!%p2185_p4)   ;;  %v2628_v1 = vmov (!%p2185_p4), 0   ;;  %v2497_v2 = vld [vmem:[%s3110_s2 + $0x8] sm:$0xff] (!%p2185_p4)   ;;  %v2629_v3 = vmov (!%p2185_p4), 0.0   ;;  %vm2630_vm0 = vmmov (!%p2185_p4), 0  }
   0xf   : > { %502 = vmatprep.subr.bf16.mxu0 (!%p2185_p4), %v2628_v1  ;;  %2347 = vmatprep.subr.bf16.mxu1 (!%p2185_p4), %v2629_v3  ;;  %558 = vst [vmem:[#allocation2 + $0x1] sm:$0x1] (!%p2185_p4), %v2629_v3  ;;  %559 = vst [vmem:[#allocation2 + $0x2] sm:$0x1] (!%p2185_p4), %v2629_v3  ;;  %v2498_v4 = vld [vmem:[%s3110_s2 + $0x10] sm:$0xff] (!%p2185_p4)   ;;  %vm383_vm1 = vcmask (!%p2185_p4), 1044480  }
  0x10   : > { %503 = vmatpush1.bf16.msra.mxu0 (!%p2185_p4), %v2496_v0  ;;  %2349 = vmatprep.mubr.msk.bf16.mxu1 (!%p2185_p4), %vm2630_vm0, %v2629_v3  ;;  %v2505_v5 = vld [vmem:[%s3111_s3] sm:$0x1f] (!%p2185_p4)   ;;  %v2499_v6 = vld [vmem:[%s3110_s2 + $0x18] sm:$0xff] (!%p2185_p4)   ;;  %vm379_vm2 = vcmask (!%p2185_p4), 80896   ;;  %vm494_vm3 = vcmask (!%p2185_p4), 179200   ;;  %v2501_v11 = vld [vmem:[%s3110_s2 + $0x28] sm:$0xff] (!%p2185_p4)  }
  0x11   : > { %504 = vmatprep.subr.bf16.mxu0 (!%p2185_p4), %v2628_v1  ;;  %v385_v7 = vsel (!%p2185_p4), %vm383_vm1, %v2505_v5, 0  ;;  %v2506_v8 = vld [vmem:[%s3109_s1] sm:$0xff] (!%p2185_p4)   ;;  %v2502_v12 = vld [vmem:[%s3110_s2 + $0x30] sm:$0xff] (!%p2185_p4)   ;;  %v2503_v13 = vld [vmem:[%s3110_s2 + $0x38] sm:$0xff] (!%p2185_p4)   ;;  %vm498_vm4 = vcmask (!%p2185_p4), 1042432  }
  0x12   : > { %2348 = vmatpush3.bf16.msra.mxu1 (!%p2185_p4), %v385_v7  ;;  %v2510_v9 = vld [vmem:[%s3108_s0 + $0x4] ss:$8 sps:$4 sm:$0xff] (!%p2185_p4)   ;;  %v2507_v15 = vld [vmem:[%s3110_s2 + $0x48] ss:$0 sps:$4 sm:$0x77] (!%p2185_p4)  }
  0x13   : > { %v2500_v10 = vld [vmem:[%s3110_s2 + $0x20] sm:$0xff] (!%p2185_p4)   ;;  %2201 = vmatprep.mubr.msk.bf16.mxu0 (!%p2185_p4), %vm494_vm3, %v2510_v9  ;;  %v500_v16 = vsel (!%p2185_p4), %vm498_vm4, %v2507_v15, 0 }
  0x14   : > { %505 = vmatpush1.bf16.msra.mxu0 (!%p2185_p4), %v2497_v2  ;;  %v2504_v14 = vld [vmem:[%s3110_s2 + $0x40] sm:$0xff] (!%p2185_p4)  }
  0x15   : > { %506 = vmatprep.subr.bf16.mxu0 %v2628_v1  ;;  %2350 = vmatmul.mubr.msk.bf16.vlgmr.msra.gmra.mrb[0].mxu1 %vm379_vm2, %v2506_v8  ;;  %v2508_v17 = vld [vmem:[%s3108_s0] ss:$8 sps:$4 sm:$0xff]  }
  0x16   : > { %v569_v54 = vld [vmem:[#allocation2 + $0x1] sm:$0x1]  ;;  %v579_v57 = vld [vmem:[#allocation2 + $0x2] sm:$0x1] }
  0x18   : > { %507 = vmatpush1.bf16.msra.mxu0 %v2498_v4 }
  0x19   : > { %508 = vmatprep.subr.bf16.mxu0 %v2628_v1 }
  0x1c   : > { %509 = vmatpush1.bf16.msra.mxu0 %v2499_v6 }
  0x1d   : > { %510 = vmatprep.subr.bf16.mxu0 %v2628_v1 }
  0x20   : > { %511 = vmatpush1.bf16.msra.mxu0 %v2500_v10 }
  0x21   : > { %512 = vmatprep.subr.bf16.mxu0 %v2628_v1 }
  0x24   : > { %513 = vmatpush1.bf16.msra.mxu0 %v2501_v11 }
  0x25   : > { %514 = vmatprep.subr.bf16.mxu0 %v2628_v1 }
  0x28   : > { %515 = vmatpush1.bf16.msra.mxu0 %v2502_v12 }
  0x29   : > { %516 = vmatprep.subr.bf16.mxu0 %v2628_v1 }
  0x2c   : > { %517 = vmatpush1.bf16.msra.mxu0 %v2503_v13 }
  0x2d   : > { %518 = vmatprep.subr.bf16.mxu0 %v2628_v1 }
  0x30   : > { %519 = vmatpush1.bf16.msra.mxu0 %v2504_v14 }
  0x31   : > { %520 = vmatprep.subr.bf16.mxu0 %v2628_v1 }
  0x34   : > { %521 = vmatpush1.bf16.msra.mxu0 %v500_v16 }
  0x37   : > { %535 = vmatmul.mubr.bf16.vlgmr.msra.gmra.mrb[0].mxu0 %v2508_v17 }
  0xe8   : > { %v421_v18 = vpop.f32.mrb[0].mxu1 }
  0xe9   : > { %v2351_v19 = vpop.f32.mrb[1].mxu1 }
  0xea   : > { %v424_v20 = vpop.f32.mrb[2].mxu1 }
  0xeb   : > { %v2352_v21 = vpop.f32.mrb[3].mxu1 }
 0x10a   : > { %v536_v22 = vpop.f32.mrb[0].mxu0 }
 0x10b   : > { %v537_v23 = vadd.f32 %v536_v22, %v421_v18  ;;  %v538_v24 = vpop.f32.mrb[1].mxu0 }
 0x10c   : > { %v539_v25 = vpop.f32.mrb[2].mxu0 }
 0x10d   : > { %v540_v26 = vadd.f32 %v539_v25, %v424_v20  ;;  %v541_v27 = vpop.f32.mrb[3].mxu0 }
 0x10f   : > { %v544_v28 = vmul.f32 0.0, %v540_v26 }
 0x111   : > { %v549_v29 = vadd.f32 %v544_v28, %v537_v23 }
 0x113   : > { %v550_v30 = vrot.slane %v549_v29, 4 }
 0x115   : > { %v551_v31 = vadd.f32 %v550_v30, %v549_v29 }
 0x117   : > { %v552_v32 = vrot.slane %v551_v31, 2 }
 0x119   : > { %v553_v33 = vadd.f32 %v552_v32, %v551_v31 }
 0x11b   : > { %v554_v34 = vrot.slane %v553_v33, 1 }
 0x11d   : > { %v555_v35 = vadd.f32 %v554_v34, %v553_v33 }
 0x11f   : > { %v556_v36 = vmul.f32 0.125, %v555_v35 }
 0x121   : > { %557 = vst [vmem:[#allocation2] sm:$0x1] %v556_v36 }
 0x128   : > { %v2202_v37 = vld [vmem:[#allocation2] ss:$0 sm:$0xff] }
 0x129   : > { %v565_v38 = vsub.f32 %v537_v23, %v2202_v37  ;;  %v566_v39 = vsub.f32 %v540_v26, %v2202_v37 }
 0x12b   : > { %v568_v40 = vmul.f32 0.0, %v566_v39  ;;  %v580_v42 = vmul.f32 %v565_v38, %v565_v38 }
 0x12d   : > { %v570_v41 = vadd.f32 %v568_v40, %v565_v38  ;;  %v581_v43 = vmul.f32 %v568_v40, %v568_v40 }
 0x12f   : > { %v571_v44 = vrot.slane %v570_v41, 4  ;;  %v582_v45 = vadd.f32 %v581_v43, %v580_v42 }
 0x131   : > { %v572_v46 = vadd.f32 %v571_v44, %v570_v41  ;;  %v583_v47 = vrot.slane %v582_v45, 4 }
 0x133   : > { %v573_v48 = vrot.slane %v572_v46, 2  ;;  %v584_v49 = vadd.f32 %v583_v47, %v582_v45 }
 0x135   : > { %v574_v50 = vadd.f32 %v573_v48, %v572_v46  ;;  %v585_v51 = vrot.slane %v584_v49, 2 }
 0x137   : > { %v575_v52 = vrot.slane %v574_v50, 1  ;;  %v586_v53 = vadd.f32 %v585_v51, %v584_v49 }
 0x139   : > { %v576_v55 = vadd.f32 %v575_v52, %v574_v50  ;;  %v587_v56 = vrot.slane %v586_v53, 1 }
 0x13b   : > { %v577_v58 = vadd.f32 %v576_v55, %v569_v54  ;;  %v588_v59 = vadd.f32 %v587_v56, %v586_v53 }
 0x13d   : > { %578 = vst [vmem:[#allocation2 + $0x1] sm:$0x1] %v577_v58  ;;  %v589_v60 = vadd.f32 %v588_v59, %v579_v57 }
 0x13f   : > { %590 = vst [vmem:[#allocation2 + $0x2] sm:$0x1] %v589_v60 }
 0x140 PF: > { %p2203_p5 = scmp.ne.s32.totalorder %s2618_s24, 1 }
 0x141   : > { %v2511_v61 = vld [vmem:[%s3110_s2] sm:$0xff] (!%p2203_p5)   ;;  %v2631_v62 = vmov (!%p2203_p5), 0   ;;  %v2512_v63 = vld [vmem:[%s3110_s2 + $0x8] sm:$0xff] (!%p2203_p5)   ;;  %v2632_v0 = vmov (!%p2203_p5), 0.0   ;;  %vm2633_vm5 = vmmov (!%p2203_p5), 0   ;;  %v2513_v1 = vld [vmem:[%s3110_s2 + $0x10] sm:$0xff] (!%p2203_p5)   ;;  %v804_v34 = vlaneseq (!%p2203_p5) }
 0x142   : > { %594 = sbr.rel (%p2203_p5) target bundleno = 856 (0x358), region = 60  ;;  %753 = vmatprep.subr.bf16.mxu0 (!%p2203_p5), %v2631_v62  ;;  %2353 = vmatprep.subr.bf16.mxu1 (!%p2203_p5), %v2632_v0  ;;  %vm634_vm6 = vcmask (!%p2203_p5), 1044480   ;;  %v2520_v2 = vld [vmem:[%s3111_s3] sm:$0x1f] (!%p2203_p5)   ;;  %v2514_v3 = vld [vmem:[%s3110_s2 + $0x18] sm:$0xff] (!%p2203_p5)   ;;  %vm630_vm7 = vcmask (!%p2203_p5), 80896  }
 0x143   : > { %754 = vmatpush1.bf16.msra.mxu0 (!%p2203_p5), %v2511_v61  ;;  %2355 = vmatprep.mubr.msk.bf16.mxu1 (!%p2203_p5), %vm2633_vm5, %v2632_v0  ;;  %v636_v4 = vsel (!%p2203_p5), %vm634_vm6, %v2520_v2, 0  ;;  %v2521_v5 = vld [vmem:[%s3109_s1] sm:$0xff] (!%p2203_p5)   ;;  %vm745_vm8 = vcmask (!%p2203_p5), 179200   ;;  %v2516_v9 = vld [vmem:[%s3110_s2 + $0x28] sm:$0xff] (!%p2203_p5)   ;;  %v2528_v11 = vld [vmem:[%s3112_s4 + $0x10] sm:$0xff] (!%p2203_p5)   ;;  %vm749_vm9 = vcmask (!%p2203_p5), 1042432  }
 0x144   : > { %755 = vmatprep.subr.bf16.mxu0 (!%p2203_p5), %v2631_v62  ;;  %v2515_v6 = vld [vmem:[%s3110_s2 + $0x20] sm:$0xff] (!%p2203_p5)   ;;  %2354 = vmatpush3.bf16.msra.mxu1 (!%p2203_p5), %v636_v4  ;;  %v2527_v10 = vld [vmem:[%s3112_s4 + $0x8] sm:$0xff] (!%p2203_p5)   ;;  %v2517_v12 = vld [vmem:[%s3110_s2 + $0x30] sm:$0xff] (!%p2203_p5)   ;;  %v805_v35 = vshrl.u32 (!%p2203_p5), %v804_v34, 7  ;;  %vm959_vm12 = vcmask (!%p2203_p5), 253952   ;;  %vm948_vm13 = vcmask (!%p2203_p5), 261120  }
 0x145   : > { %v2525_v7 = vld [vmem:[%s3108_s0 + $0x4] ss:$8 sps:$4 sm:$0xff] (!%p2203_p5)   ;;  %2359 = vmatprep.subr.bf16.mxu1 (!%p2203_p5), %v2632_v0  ;;  %v2518_v13 = vld [vmem:[%s3110_s2 + $0x38] sm:$0xff] (!%p2203_p5)   ;;  %v2522_v15 = vld [vmem:[%s3110_s2 + $0x48] ss:$0 sps:$4 sm:$0x77] (!%p2203_p5)  }
 0x146   : > { %v2526_v8 = vld [vmem:[%s3112_s4] sm:$0xff] (!%p2203_p5)   ;;  %2219 = vmatprep.mubr.msk.bf16.mxu0 (!%p2203_p5), %vm745_vm8, %v2525_v7  ;;  %v751_v16 = vsel (!%p2203_p5), %vm749_vm9, %v2522_v15, 0  ;;  %v2529_v18 = vld [vmem:[%s3112_s4 + $0x18] sm:$0xff] (!%p2203_p5)   ;;  %v2531_v20 = vld [vmem:[%s3112_s4 + $0x28] sm:$0xff] (!%p2203_p5)   ;;  %v806_v38 = vsub.s32 (!%p2203_p5), 0, %v805_v35 }
 0x147   : > { %756 = vmatpush1.bf16.msra.mxu0 (!%p2203_p5), %v2512_v63  ;;  %2356 = vmatmul.mubr.msk.bf16.vlgmr.msra.gmra.mrb[0].mxu1 (!%p2203_p5), %vm630_vm7, %v2521_v5  ;;  %v2519_v14 = vld [vmem:[%s3110_s2 + $0x40] sm:$0xff] (!%p2203_p5)   ;;  %v2532_v21 = vld [vmem:[%s3112_s4 + $0x30] sm:$0xff] (!%p2203_p5)   ;;  %v2533_v22 = vld [vmem:[%s3112_s4 + $0x38] sm:$0xff] (!%p2203_p5)   ;;  %961 = vst.msk [vmem:[#allocation2 + $0x4] sm:$0x1] (!%p2203_p5), %vm959_vm12, %v2632_v0 }
 0x148   : > { %757 = vmatprep.subr.bf16.mxu0 (!%p2203_p5), %v2631_v62  ;;  %2360 = vmatpush3.bf16.msra.mxu1 (!%p2203_p5), %v2526_v8  ;;  %v2523_v17 = vld [vmem:[%s3108_s0] ss:$8 sps:$4 sm:$0xff] (!%p2203_p5)   ;;  %962 = vst.msk [vmem:[#allocation2 + $0x5] sm:$0x1] (!%p2203_p5), %vm959_vm12, %v2632_v0 }
 0x149   : > { %2361 = vmatprep.subr.bf16.mxu1 %v2632_v0  ;;  %2375 = vmatprep.mubr.msk.bf16.mxu1 %vm2633_vm5, %v2632_v0  ;;  %v2530_v19 = vld [vmem:[%s3112_s4 + $0x20] sm:$0xff]  }
 0x14a   : > { %v795_v23 = vld [vmem:[#allocation2 + $0x1] sm:$0x1]  ;;  %v797_v25 = vld [vmem:[#allocation2 + $0x2] sm:$0x1]  ;;  %v794_v36 = vld [vmem:[#allocation2] sm:$0x1] }
 0x14b   : > { %758 = vmatpush1.bf16.msra.mxu0 %v2513_v1  ;;  %v796_v24 = vmul.f32 0.125, %v795_v23  ;;  %v798_v29 = vmul.f32 0.125, %v797_v25  ;;  %v2220_v49 = vld [vmem:[%s3114_s6] ss:$0 sm:$0xff]  ;;  %v2221_v52 = vld [vmem:[%s3114_s6 + $0x1] ss:$0 sm:$0xff] }
 0x14c   : > { %759 = vmatprep.subr.bf16.mxu0 %v2631_v62  ;;  %2362 = vmatpush3.bf16.msra.mxu1 %v2527_v10 }
 0x14d   : > { %2363 = vmatprep.subr.bf16.mxu1 %v2632_v0  ;;  %v799_v30 = vmul.f32 %v796_v24, %v796_v24  ;;  %v803_v37 = vadd.f32 %v796_v24, %v794_v36 }
 0x14e   : > { %v972_v35 = vld [vmem:[#allocation2 + $0x4] sm:$0x1] }
 0x14f   : > { %760 = vmatpush1.bf16.msra.mxu0 %v2514_v3  ;;  %v800_v32 = vsub.f32 %v798_v29, %v799_v30  ;;  %v807_v40 = vrot.slane %v803_v37, %v806_v38 }
 0x150   : > { %761 = vmatprep.subr.bf16.mxu0 %v2631_v62  ;;  %2364 = vmatpush3.bf16.msra.mxu1 %v2528_v11 }
 0x151   : > { %2365 = vmatprep.subr.bf16.mxu1 %v2632_v0  ;;  %v810_v33 = vadd.f32 1e-05, %v800_v32 }
 0x153   : > { %762 = vmatpush1.bf16.msra.mxu0 %v2515_v6  ;;  %2534 = vrsqrt.f32 %v810_v33 }
 0x154   : > { %763 = vmatprep.subr.bf16.mxu0 %v2631_v62  ;;  %2366 = vmatpush3.bf16.msra.mxu1 %v2529_v18 }
 0x155   : > { %2367 = vmatprep.subr.bf16.mxu1 %v2632_v0 }
 0x157   : > { %764 = vmatpush1.bf16.msra.mxu0 %v2516_v9 }
 0x158   : > { %765 = vmatprep.subr.bf16.mxu0 %v2631_v62  ;;  %2368 = vmatpush3.bf16.msra.mxu1 %v2530_v19 }
 0x159   : > { %2369 = vmatprep.subr.bf16.mxu1 %v2632_v0 }
 0x15b   : > { %766 = vmatpush1.bf16.msra.mxu0 %v2517_v12 }
 0x15c   : > { %767 = vmatprep.subr.bf16.mxu0 %v2631_v62  ;;  %2370 = vmatpush3.bf16.msra.mxu1 %v2531_v20 }
 0x15d   : > { %2371 = vmatprep.subr.bf16.mxu1 %v2632_v0  ;;  %v2535_v39 = vpop.eup %2534 }
 0x15e   : > { %v815_v43 = vrot.slane %v2535_v39, %v806_v38  ;;  %v986_v38 = vld [vmem:[#allocation2 + $0x5] sm:$0x1] }
 0x15f   : > { %768 = vmatpush1.bf16.msra.mxu0 %v2518_v13 }
 0x160   : > { %769 = vmatprep.subr.bf16.mxu0 %v2631_v62  ;;  %2372 = vmatpush3.bf16.msra.mxu1 %v2532_v21 }
 0x161   : > { %2373 = vmatprep.subr.bf16.mxu1 %v2632_v0 }
 0x163   : > { %770 = vmatpush1.bf16.msra.mxu0 %v2519_v14 }
 0x164   : > { %771 = vmatprep.subr.bf16.mxu0 %v2631_v62  ;;  %2374 = vmatpush3.bf16.msra.mxu1 %v2533_v22 }
 0x167   : > { %772 = vmatpush1.bf16.msra.mxu0 %v751_v16 }
 0x16a   : > { %786 = vmatmul.mubr.bf16.vlgmr.msra.gmra.mrb[0].mxu0 %v2523_v17 }
 0x21a   : > { %v672_v26 = vpop.f32.mrb[0].mxu1 }
 0x21b   : > { %v2357_v27 = vpop.f32.mrb[1].mxu1 }
 0x21c   : > { %v675_v28 = vpop.f32.mrb[2].mxu1 }
 0x21d   : > { %v2358_v31 = vpop.f32.mrb[3].mxu1 }
 0x23d   : > { %v787_v41 = vpop.f32.mrb[0].mxu0 }
 0x23e   : > { %v788_v42 = vadd.f32 %v787_v41, %v672_v26  ;;  %v789_v44 = vpop.f32.mrb[1].mxu0 }
 0x23f   : > { %v790_v45 = vpop.f32.mrb[2].mxu0 }
 0x240   : > { %v808_v46 = vsub.f32 %v788_v42, %v807_v40  ;;  %v791_v47 = vadd.f32 %v790_v45, %v675_v28  ;;  %v792_v48 = vpop.f32.mrb[3].mxu0 }
 0x242   : > { %v816_v50 = vmul.f32 %v815_v43, %v808_v46  ;;  %v809_v51 = vsub.f32 %v791_v47, %v807_v40 }
 0x244   : > { %v822_v53 = vmul.f32 %v2220_v49, %v816_v50  ;;  %v817_v54 = vmul.f32 %v815_v43, %v809_v51 }
 0x246   : > { %v828_v55 = vadd.f32 %v2221_v52, %v822_v53  ;;  %v823_v56 = vmul.f32 %v2220_v49, %v817_v54 }
 0x248   : > { %v829_v57 = vadd.f32 %v2221_v52, %v823_v56  ;;  %v832_v58 = vmul.f32 0.01, %v828_v55  ;;  %vm830_vm10 = vcmp.ge.f32.partialorder %v828_v55, 0.0 }
 0x24a   : > { %vm831_vm11 = vcmp.ge.f32.partialorder %v829_v57, 0.0  ;;  %v833_v59 = vmul.f32 0.01, %v829_v57  ;;  %v834_v60 = vsel %vm830_vm10, %v828_v55, %v832_v58 }
 0x24c   : > { %v835_v61 = vsel %vm831_vm11, %v829_v57, %v833_v59 }
 0x24d   : > { %v836_v62 = vpack.c.bf16 %v835_v61, %v834_v60 }
 0x24f   : > { %2376 = vmatmul.mubr.bf16.vlgmr.msra.gmra.mrb[4].mxu1 %v836_v62 }
 0x322   : > { %v935_v63 = vpop.f32.mrb[4].mxu1 }
 0x323   : > { %v2377_v1 = vpop.f32.mrb[5].mxu1  ;;  %v949_v5 = vsel %vm948_vm13, %v935_v63, 0.0 }
 0x324   : > { %v938_v2 = vpop.f32.mrb[6].mxu1 }
 0x325   : > { %v943_v3 = vmul.f32 0.0, %v938_v2  ;;  %v2378_v4 = vpop.f32.mrb[7].mxu1 }
 0x327   : > { %v950_v6 = vsel %vm948_vm13, %v943_v3, 0.0 }
 0x328   : > { %v951_v7 = vadd.f32 %v950_v6, %v949_v5 }
 0x32a   : > { %v952_v8 = vrot.slane %v951_v7, 4 }
 0x32c   : > { %v953_v9 = vadd.f32 %v952_v8, %v951_v7 }
 0x32e   : > { %v954_v10 = vrot.slane %v953_v9, 2 }
 0x330   : > { %v955_v11 = vadd.f32 %v954_v10, %v953_v9 }
 0x332   : > { %v956_v12 = vrot.slane %v955_v11, 1 }
 0x334   : > { %v957_v13 = vadd.f32 %v956_v12, %v955_v11 }
 0x336   : > { %v958_v14 = vmul.f32 0.125, %v957_v13 }
 0x338   : > { %960 = vst.msk [vmem:[#allocation2 + $0x3] sm:$0x1] %vm959_vm12, %v958_v14 }
 0x33f   : > { %v2230_v0 = vld [vmem:[#allocation2 + $0x3] ss:$0 sm:$0xff] }
 0x340   : > { %v968_v15 = vsub.f32 %v935_v63, %v2230_v0  ;;  %v969_v16 = vsub.f32 %v938_v2, %v2230_v0 }
 0x342   : > { %v971_v17 = vmul.f32 0.0, %v969_v16  ;;  %v987_v18 = vmul.f32 %v968_v15, %v968_v15  ;;  %v974_v19 = vsel %vm948_vm13, %v968_v15, 0.0 }
 0x344   : > { %v975_v20 = vsel %vm948_vm13, %v971_v17, 0.0  ;;  %v988_v21 = vmul.f32 %v971_v17, %v971_v17  ;;  %v989_v23 = vsel %vm948_vm13, %v987_v18, 0.0 }
 0x345   : > { %v976_v22 = vadd.f32 %v975_v20, %v974_v19 }
 0x346   : > { %v990_v24 = vsel %vm948_vm13, %v988_v21, 0.0 }
 0x347   : > { %v977_v25 = vrot.slane %v976_v22, 4  ;;  %v991_v26 = vadd.f32 %v990_v24, %v989_v23 }
 0x349   : > { %v978_v27 = vadd.f32 %v977_v25, %v976_v22  ;;  %v992_v28 = vrot.slane %v991_v26, 4 }
 0x34b   : > { %v979_v29 = vrot.slane %v978_v27, 2  ;;  %v993_v30 = vadd.f32 %v992_v28, %v991_v26 }
 0x34d   : > { %v980_v31 = vadd.f32 %v979_v29, %v978_v27  ;;  %v994_v32 = vrot.slane %v993_v30, 2 }
 0x34f   : > { %v981_v33 = vrot.slane %v980_v31, 1  ;;  %v995_v34 = vadd.f32 %v994_v32, %v993_v30 }
 0x351   : > { %v982_v36 = vadd.f32 %v981_v33, %v980_v31  ;;  %v996_v37 = vrot.slane %v995_v34, 1 }
 0x353   : > { %v983_v39 = vadd.f32 %v982_v36, %v972_v35  ;;  %v997_v40 = vadd.f32 %v996_v37, %v995_v34 }
 0x355   : > { %985 = vst.msk [vmem:[#allocation2 + $0x4] sm:$0x1] %vm959_vm12, %v983_v39  ;;  %v998_v41 = vadd.f32 %v997_v40, %v986_v38 }
 0x357   : > { %999 = vst.msk [vmem:[#allocation2 + $0x5] sm:$0x1] %vm959_vm12, %v998_v41 }
 0x358 PF: > { %p2231_p6 = scmp.ne.s32.totalorder %s2618_s24, 2 }
 0x359   : > { %vm1043_vm14 = vcmask (!%p2231_p6), 1044480   ;;  %v2634_v42 = vmov (!%p2231_p6), 0.0   ;;  %v2536_v43 = vld [vmem:[%s3111_s3] sm:$0x1f] (!%p2231_p6)   ;;  %vm2635_vm15 = vmmov (!%p2231_p6), 0   ;;  %vm1039_vm0 = vcmask (!%p2231_p6), 80896  }
 0x35a   : > { %1003 = sbr.rel (%p2231_p6) target bundleno = 1937 (0x791), region = 68  ;;  %2379 = vmatprep.subr.bf16.mxu0 (!%p2231_p6), %v2634_v42  ;;  %2385 = vmatprep.subr.bf16.mxu1 (!%p2231_p6), %v2634_v42  ;;  %v1045_v44 = vsel (!%p2231_p6), %vm1043_vm14, %v2536_v43, 0  ;;  %v2537_v45 = vld [vmem:[%s3109_s1] sm:$0xff] (!%p2231_p6)   ;;  %v2636_v47 = vmov (!%p2231_p6), 0   ;;  %v2539_v48 = vld [vmem:[%s3110_s2 + $0x8] sm:$0xff] (!%p2231_p6)   ;;  %v2540_v49 = vld [vmem:[%s3110_s2 + $0x10] sm:$0xff] (!%p2231_p6)   ;;  %v1213_v12 = vlaneseq (!%p2231_p6) }
 0x35b   : > { %2381 = vmatprep.mubr.msk.bf16.mxu0 (!%p2231_p6), %vm2635_vm15, %v2634_v42  ;;  %2401 = vmatprep.mubr.msk.bf16.mxu1 (!%p2231_p6), %vm2635_vm15, %v2634_v42  ;;  %v2538_v46 = vld [vmem:[%s3110_s2] sm:$0xff] (!%p2231_p6)   ;;  %vm1154_vm1 = vcmask (!%p2231_p6), 179200   ;;  %v2541_v52 = vld [vmem:[%s3110_s2 + $0x18] sm:$0xff] (!%p2231_p6)   ;;  %v2552_v53 = vld [vmem:[%s3112_s4 + $0x8] sm:$0xff] (!%p2231_p6)   ;;  %vm1158_vm2 = vcmask (!%p2231_p6), 1042432   ;;  %vm1393_vm6 = vcmask (!%p2231_p6), 261120  }
 0x35c   : > { %2380 = vmatpush3.bf16.msra.mxu0 (!%p2231_p6), %v1045_v44  ;;  %v2548_v50 = vld [vmem:[%s3108_s0 + $0x4] ss:$8 sps:$4 sm:$0xff] (!%p2231_p6)   ;;  %v2553_v55 = vld [vmem:[%s3112_s4 + $0x10] sm:$0xff] (!%p2231_p6)   ;;  %v2554_v57 = vld [vmem:[%s3112_s4 + $0x18] sm:$0xff] (!%p2231_p6)   ;;  %v1214_v13 = vshrl.u32 (!%p2231_p6), %v1213_v12, 7  ;;  %vm1513_vm8 = vcmask (!%p2231_p6), 516096  }
 0x35d   : > { %1162 = vmatprep.subr.bf16.mxu0 (!%p2231_p6), %v2636_v47  ;;  %v2551_v51 = vld [vmem:[%s3112_s4] sm:$0xff] (!%p2231_p6)   ;;  %v2543_v56 = vld [vmem:[%s3110_s2 + $0x28] sm:$0xff] (!%p2231_p6)   ;;  %v2544_v58 = vld [vmem:[%s3110_s2 + $0x30] sm:$0xff] (!%p2231_p6)   ;;  %1515 = vst.msk [vmem:[#allocation2 + $0x7] sm:$0x1] (!%p2231_p6), %vm1513_vm8, %v2634_v42  ;;  %vm1502_vm9 = vcmask (!%p2231_p6), 523264  }
 0x35e   : > { %2386 = vmatpush3.bf16.msra.mxu1 (!%p2231_p6), %v2551_v51  ;;  %v2542_v54 = vld [vmem:[%s3110_s2 + $0x20] sm:$0xff] (!%p2231_p6)   ;;  %v2545_v59 = vld [vmem:[%s3110_s2 + $0x38] sm:$0xff] (!%p2231_p6)   ;;  %v2547_v61 = vld [vmem:[%s3110_s2 + $0x48] ss:$0 sps:$4 sm:$0x77] (!%p2231_p6)   ;;  %v1215_v15 = vsub.s32 (!%p2231_p6), 0, %v1214_v13 }
 0x35f   : > { %2382 = vmatmul.mubr.msk.bf16.vlgmr.msra.gmra.mrb[0].mxu0 (!%p2231_p6), %vm1039_vm0, %v2537_v45  ;;  %2387 = vmatprep.subr.bf16.mxu1 (!%p2231_p6), %v2634_v42  ;;  %v2546_v60 = vld [vmem:[%s3110_s2 + $0x40] sm:$0xff] (!%p2231_p6)   ;;  %v1160_v62 = vsel (!%p2231_p6), %vm1158_vm2, %v2547_v61, 0  ;;  %v2556_v2 = vld [vmem:[%s3112_s4 + $0x28] sm:$0xff] (!%p2231_p6)   ;;  %v2557_v3 = vld [vmem:[%s3112_s4 + $0x30] sm:$0xff] (!%p2231_p6)   ;;  %1516 = vst.msk [vmem:[#allocation2 + $0x8] sm:$0x1] (!%p2231_p6), %vm1513_vm8, %v2634_v42 }
 0x360   : > { %1163 = vmatpush1.bf16.msra.mxu0 (!%p2231_p6), %v2538_v46  ;;  %2247 = vmatprep.mubr.msk.bf16.mxu0 (!%p2231_p6), %vm1154_vm1, %v2548_v50  ;;  %v2550_v63 = vld [vmem:[%s3108_s0] ss:$8 sps:$4 sm:$0xff] (!%p2231_p6)   ;;  %v2558_v4 = vld [vmem:[%s3112_s4 + $0x38] sm:$0xff] (!%p2231_p6)   ;;  %v1352_v38 = vld [vmem:[#allocation2 + $0x4] sm:$0x1] (!%p2231_p6) }
 0x361   : > { %1164 = vmatprep.subr.bf16.mxu0 %v2636_v47  ;;  %v2555_v1 = vld [vmem:[%s3112_s4 + $0x20] sm:$0xff]   ;;  %v1353_v39 = vmul.f32 0.125, %v1352_v38 }
 0x362   : > { %2388 = vmatpush3.bf16.msra.mxu1 %v2552_v53  ;;  %v1204_v5 = vld [vmem:[#allocation2 + $0x1] sm:$0x1]  ;;  %v1206_v7 = vld [vmem:[#allocation2 + $0x2] sm:$0x1]  ;;  %v1203_v14 = vld [vmem:[#allocation2] sm:$0x1] }
 0x363   : > { %2389 = vmatprep.subr.bf16.mxu1 %v2634_v42  ;;  %v1205_v6 = vmul.f32 0.125, %v1204_v5  ;;  %v1207_v8 = vmul.f32 0.125, %v1206_v7  ;;  %v2248_v22 = vld [vmem:[%s3114_s6] ss:$0 sm:$0xff]  ;;  %v2249_v27 = vld [vmem:[%s3114_s6 + $0x1] ss:$0 sm:$0xff]  ;;  %v1356_v43 = vmul.f32 %v1353_v39, %v1353_v39 }
 0x364   : > { %1165 = vmatpush1.bf16.msra.mxu0 %v2539_v48  ;;  %v1354_v40 = vld [vmem:[#allocation2 + $0x5] sm:$0x1]  ;;  %v1351_v46 = vld [vmem:[#allocation2 + $0x3] sm:$0x1] }
 0x365   : > { %1166 = vmatprep.subr.bf16.mxu0 %v2636_v47  ;;  %v1208_v9 = vmul.f32 %v1205_v6, %v1205_v6  ;;  %v1212_v0 = vadd.f32 %v1205_v6, %v1203_v14  ;;  %v1355_v41 = vmul.f32 0.125, %v1354_v40 }
 0x366   : > { %2390 = vmatpush3.bf16.msra.mxu1 %v2553_v55 }
 0x367   : > { %2391 = vmatprep.subr.bf16.mxu1 %v2634_v42  ;;  %v1209_v10 = vsub.f32 %v1207_v8, %v1208_v9  ;;  %v1216_v17 = vrot.slane %v1212_v0, %v1215_v15  ;;  %v1357_v44 = vsub.f32 %v1355_v41, %v1356_v43 }
 0x368   : > { %1167 = vmatpush1.bf16.msra.mxu0 %v2540_v49 }
 0x369   : > { %1168 = vmatprep.subr.bf16.mxu0 %v2636_v47  ;;  %v1219_v11 = vadd.f32 1e-05, %v1209_v10  ;;  %v1367_v45 = vadd.f32 1e-05, %v1357_v44 }
 0x36a   : > { %2392 = vmatpush3.bf16.msra.mxu1 %v2554_v57 }
 0x36b   : > { %2393 = vmatprep.subr.bf16.mxu1 %v2634_v42  ;;  %2561 = vrsqrt.f32 %v1219_v11 }
 0x36c   : > { %1169 = vmatpush1.bf16.msra.mxu0 %v2541_v52  ;;  %2563 = vrsqrt.f32 %v1367_v45 }
 0x36d   : > { %1170 = vmatprep.subr.bf16.mxu0 %v2636_v47 }
 0x36e   : > { %2394 = vmatpush3.bf16.msra.mxu1 %v2555_v1 }
 0x36f   : > { %2395 = vmatprep.subr.bf16.mxu1 %v2634_v42 }
 0x370   : > { %1171 = vmatpush1.bf16.msra.mxu0 %v2542_v54  ;;  %v2258_v54 = vld [vmem:[%s3114_s6 + $0x2] ss:$0 sm:$0xff] }
 0x371   : > { %1172 = vmatprep.subr.bf16.mxu0 %v2636_v47 }
 0x372   : > { %2396 = vmatpush3.bf16.msra.mxu1 %v2556_v2 }
 0x373   : > { %2397 = vmatprep.subr.bf16.mxu1 %v2634_v42 }
 0x374   : > { %1173 = vmatpush1.bf16.msra.mxu0 %v2543_v56 }
 0x375   : > { %1174 = vmatprep.subr.bf16.mxu0 %v2636_v47  ;;  %v2562_v16 = vpop.eup %2561 }
 0x376   : > { %2398 = vmatpush3.bf16.msra.mxu1 %v2557_v3  ;;  %v1224_v18 = vrot.slane %v2562_v16, %v1215_v15  ;;  %v2564_v48 = vpop.eup %2563 }
 0x377   : > { %2399 = vmatprep.subr.bf16.mxu1 %v2634_v42  ;;  %v1372_v50 = vrot.slane %v2564_v48, %v1215_v15 }
 0x378   : > { %1175 = vmatpush1.bf16.msra.mxu0 %v2544_v58 }
 0x379   : > { %1176 = vmatprep.subr.bf16.mxu0 %v2636_v47 }
 0x37a   : > { %2400 = vmatpush3.bf16.msra.mxu1 %v2558_v4 }
 0x37b   : > { %2405 = vmatprep.subr.bf16.mxu1 %v2634_v42 }
 0x37c   : > { %1177 = vmatpush1.bf16.msra.mxu0 %v2545_v59  ;;  %v2259_v59 = vld [vmem:[%s3114_s6 + $0x3] ss:$0 sm:$0xff] }
 0x37d   : > { %1178 = vmatprep.subr.bf16.mxu0 %v2636_v47 }
 0x380   : > { %1179 = vmatpush1.bf16.msra.mxu0 %v2546_v60 }
 0x381   : > { %1180 = vmatprep.subr.bf16.mxu0 %v2636_v47  ;;  %v1360_v47 = vadd.f32 %v1353_v39, %v1351_v46 }
 0x383   : > { %v1364_v49 = vrot.slane %v1360_v47, %v1215_v15 }
 0x384   : > { %1181 = vmatpush1.bf16.msra.mxu0 %v1160_v62 }
 0x387   : > { %1195 = vmatmul.mubr.bf16.vlgmr.msra.gmra.mrb[0].mxu0 %v2550_v63 }
 0x45a   : > { %v1196_v19 = vpop.f32.mrb[0].mxu0 }
 0x45b   : > { %v1217_v20 = vsub.f32 %v1196_v19, %v1216_v17  ;;  %v1198_v21 = vpop.f32.mrb[1].mxu0 }
 0x45c   : > { %v1199_v23 = vpop.f32.mrb[2].mxu0 }
 0x45d   : > { %v1225_v24 = vmul.f32 %v1224_v18, %v1217_v20  ;;  %v1218_v25 = vsub.f32 %v1199_v23, %v1216_v17  ;;  %v1201_v26 = vpop.f32.mrb[3].mxu0  ;;  %v2559_v17 = vld [vmem:[%s3113_s5] sm:$0xff]  }
 0x45f   : > { %v1231_v28 = vmul.f32 %v2248_v22, %v1225_v24  ;;  %v1226_v29 = vmul.f32 %v1224_v18, %v1218_v25  ;;  %v2560_v18 = vld [vmem:[%s3113_s5 + $0x8] sm:$0xff]  }
 0x461   : > { %v1237_v30 = vadd.f32 %v2249_v27, %v1231_v28  ;;  %v1232_v31 = vmul.f32 %v2248_v22, %v1226_v29 }
 0x463   : > { %v1238_v32 = vadd.f32 %v2249_v27, %v1232_v31  ;;  %v1241_v33 = vmul.f32 0.01, %v1237_v30  ;;  %vm1239_vm3 = vcmp.ge.f32.partialorder %v1237_v30, 0.0  ;;  %v2260_v27 = vld [vmem:[%s3114_s6 + $0x4] ss:$0 sm:$0xff] }
 0x464   : > { %v2261_v31 = vld [vmem:[%s3114_s6 + $0x5] ss:$0 sm:$0xff] }
 0x465   : > { %vm1240_vm4 = vcmp.ge.f32.partialorder %v1238_v32, 0.0  ;;  %v1242_v34 = vmul.f32 0.01, %v1238_v32  ;;  %v1243_v35 = vsel %vm1239_vm3, %v1237_v30, %v1241_v33 }
 0x467   : > { %v1244_v36 = vsel %vm1240_vm4, %v1238_v32, %v1242_v34 }
 0x468   : > { %v1245_v37 = vpack.c.bf16 %v1244_v36, %v1243_v35 }
 0x46a   : > { %2402 = vmatmul.mubr.bf16.vlgmr.msra.gmra.mrb[0].mxu1 %v1245_v37 }
 0x46b   : > { %2409 = vmatprep.mubr.msk.bf16.mxu1 %vm2635_vm15, %v2634_v42  ;;  %2406 = vmatpush3.bf16.msra.mxu1 %v2559_v17 }
 0x46c   : > { %2407 = vmatprep.subr.bf16.mxu1 %v2634_v42 }
 0x46f   : > { %2408 = vmatpush3.bf16.msra.mxu1 %v2560_v18 }
 0x53d   : > { %v1344_v51 = vpop.f32.mrb[0].mxu1 }
 0x53e   : > { %v1365_v52 = vsub.f32 %v1344_v51, %v1364_v49  ;;  %v2403_v53 = vpop.f32.mrb[1].mxu1 }
 0x53f   : > { %v1347_v55 = vpop.f32.mrb[2].mxu1 }
 0x540   : > { %v1373_v56 = vmul.f32 %v1372_v50, %v1365_v52  ;;  %v1366_v57 = vsub.f32 %v1347_v55, %v1364_v49  ;;  %v2404_v58 = vpop.f32.mrb[3].mxu1 }
 0x542   : > { %v1379_v60 = vmul.f32 %v2258_v54, %v1373_v56  ;;  %v1374_v61 = vmul.f32 %v1372_v50, %v1366_v57 }
 0x544   : > { %v1380_v62 = vmul.f32 %v2258_v54, %v1374_v61  ;;  %v1385_v63 = vadd.f32 %v2259_v59, %v1379_v60 }
 0x546   : > { %vm1387_vm5 = vcmp.ge.f32.partialorder %v1385_v63, 0.0  ;;  %v1389_v1 = vmul.f32 0.01, %v1385_v63  ;;  %v1386_v2 = vadd.f32 %v2259_v59, %v1380_v62 }
 0x548   : > { %v1391_v3 = vsel %vm1387_vm5, %v1385_v63, %v1389_v1  ;;  %vm1388_vm7 = vcmp.ge.f32.partialorder %v1386_v2, 0.0  ;;  %v1390_v4 = vmul.f32 0.01, %v1386_v2 }
 0x549   : > { %v1394_v5 = vsel %vm1393_vm6, %v1391_v3, 0.0 }
 0x54a   : > { %1395 = vadd.xlane.f32.xlu0 %v1394_v5  ;;  %v1392_v6 = vsel %vm1388_vm7, %v1386_v2, %v1390_v4 }
 0x54b   : > { %v1397_v7 = vsel %vm1393_vm6, %v1392_v6, 0.0 }
 0x54e   : > { %1398 = vadd.xlane.f32.xlu0 %v1397_v7 }
 0x5d7   : > { %v1396_v8 = vpop.xlane.xlu0 %1395 }
 0x5d8   : > { %v1401_v9 = vmul.f32 0.03125, %v1396_v8 }
 0x5da   : > { %v1403_v10 = vsub.f32 %v1391_v3, %v1401_v9  ;;  %v1526_v9 = vld [vmem:[#allocation2 + $0x7] sm:$0x1] }
 0x5db   : > { %v1399_v11 = vpop.xlane.xlu0 %1398 }
 0x5dc   : > { %v1402_v12 = vmul.f32 0.03125, %v1399_v11  ;;  %v1405_v13 = vmul.f32 %v1403_v10, %v1403_v10 }
 0x5de   : > { %v1404_v14 = vsub.f32 %v1392_v6, %v1402_v12  ;;  %v1407_v0 = vsel %vm1393_vm6, %v1405_v13, 0.0  ;;  %v1540_v12 = vld [vmem:[#allocation2 + $0x8] sm:$0x1] }
 0x5df   : > { %1408 = vadd.xlane.f32.xlu1 %v1407_v0 }
 0x5e0   : > { %v1406_v15 = vmul.f32 %v1404_v14, %v1404_v14 }
 0x5e2   : > { %v1410_v16 = vsel %vm1393_vm6, %v1406_v15, 0.0 }
 0x5e3   : > { %1411 = vadd.xlane.f32.xlu1 %v1410_v16 }
 0x66c   : > { %v1409_v19 = vpop.xlane.xlu1 %1408 }
 0x66d   : > { %v1413_v20 = vmul.f32 0.03125, %v1409_v19 }
 0x66f   : > { %v1415_v21 = vadd.f32 1e-05, %v1413_v20 }
 0x670   : > { %v1412_v22 = vpop.xlane.xlu1 %1411 }
 0x671   : > { %2565 = vrsqrt.f32 %v1415_v21  ;;  %v1414_v23 = vmul.f32 0.03125, %v1412_v22 }
 0x673   : > { %v1416_v24 = vadd.f32 1e-05, %v1414_v23 }
 0x675   : > { %2567 = vrsqrt.f32 %v1416_v24 }
 0x67b   : > { %v2566_v25 = vpop.eup %2565 }
 0x67c   : > { %v1419_v26 = vmul.f32 %v2566_v25, %v1403_v10 }
 0x67e   : > { %v1426_v29 = vmul.f32 %v2260_v27, %v1419_v26 }
 0x67f   : > { %v2568_v28 = vpop.eup %2567 }
 0x680   : > { %v1420_v30 = vmul.f32 %v2568_v28, %v1404_v14  ;;  %v1433_v33 = vadd.f32 %v2261_v31, %v1426_v29 }
 0x682   : > { %v1427_v32 = vmul.f32 %v2260_v27, %v1420_v30 }
 0x684   : > { %v1434_v34 = vadd.f32 %v2261_v31, %v1427_v32 }
 0x686   : > { %v1435_v35 = vpack.c.bf16 %v1434_v34, %v1433_v33 }
 0x688   : > { %2410 = vmatmul.mubr.msk.bf16.vlgmr.msra.gmra.mrb[4].mxu1 %vm1393_vm6, %v1435_v35 }
 0x75b   : > { %v1489_v36 = vpop.f32.mrb[4].mxu1 }
 0x75c   : > { %v2411_v37 = vpop.f32.mrb[5].mxu1  ;;  %v1503_v41 = vsel %vm1502_vm9, %v1489_v36, 0.0 }
 0x75d   : > { %v1492_v38 = vpop.f32.mrb[6].mxu1 }
 0x75e   : > { %v1497_v39 = vmul.f32 0.0, %v1492_v38  ;;  %v2412_v40 = vpop.f32.mrb[7].mxu1 }
 0x760   : > { %v1504_v43 = vsel %vm1502_vm9, %v1497_v39, 0.0 }
 0x761   : > { %v1505_v44 = vadd.f32 %v1504_v43, %v1503_v41 }
 0x763   : > { %v1506_v45 = vrot.slane %v1505_v44, 4 }
 0x765   : > { %v1507_v46 = vadd.f32 %v1506_v45, %v1505_v44 }
 0x767   : > { %v1508_v47 = vrot.slane %v1507_v46, 2 }
 0x769   : > { %v1509_v48 = vadd.f32 %v1508_v47, %v1507_v46 }
 0x76b   : > { %v1510_v49 = vrot.slane %v1509_v48, 1 }
 0x76d   : > { %v1511_v50 = vadd.f32 %v1510_v49, %v1509_v48 }
 0x76f   : > { %v1512_v51 = vmul.f32 0.125, %v1511_v50 }
 0x771   : > { %1514 = vst.msk [vmem:[#allocation2 + $0x6] sm:$0x1] %vm1513_vm8, %v1512_v51 }
 0x778   : > { %v2265_v42 = vld [vmem:[#allocation2 + $0x6] ss:$0 sm:$0xff] }
 0x779   : > { %v1522_v52 = vsub.f32 %v1489_v36, %v2265_v42  ;;  %v1523_v53 = vsub.f32 %v1492_v38, %v2265_v42 }
 0x77b   : > { %v1525_v54 = vmul.f32 0.0, %v1523_v53  ;;  %v1541_v55 = vmul.f32 %v1522_v52, %v1522_v52  ;;  %v1528_v56 = vsel %vm1502_vm9, %v1522_v52, 0.0 }
 0x77d   : > { %v1529_v57 = vsel %vm1502_vm9, %v1525_v54, 0.0  ;;  %v1542_v58 = vmul.f32 %v1525_v54, %v1525_v54  ;;  %v1543_v60 = vsel %vm1502_vm9, %v1541_v55, 0.0 }
 0x77e   : > { %v1530_v59 = vadd.f32 %v1529_v57, %v1528_v56 }
 0x77f   : > { %v1544_v61 = vsel %vm1502_vm9, %v1542_v58, 0.0 }
 0x780   : > { %v1531_v62 = vrot.slane %v1530_v59, 4  ;;  %v1545_v63 = vadd.f32 %v1544_v61, %v1543_v60 }
 0x782   : > { %v1532_v1 = vadd.f32 %v1531_v62, %v1530_v59  ;;  %v1546_v2 = vrot.slane %v1545_v63, 4 }
 0x784   : > { %v1533_v3 = vrot.slane %v1532_v1, 2  ;;  %v1547_v4 = vadd.f32 %v1546_v2, %v1545_v63 }
 0x786   : > { %v1534_v5 = vadd.f32 %v1533_v3, %v1532_v1  ;;  %v1548_v6 = vrot.slane %v1547_v4, 2 }
 0x788   : > { %v1535_v7 = vrot.slane %v1534_v5, 1  ;;  %v1549_v8 = vadd.f32 %v1548_v6, %v1547_v4 }
 0x78a   : > { %v1536_v10 = vadd.f32 %v1535_v7, %v1534_v5  ;;  %v1550_v11 = vrot.slane %v1549_v8, 1 }
 0x78c   : > { %v1537_v13 = vadd.f32 %v1536_v10, %v1526_v9  ;;  %v1551_v14 = vadd.f32 %v1550_v11, %v1549_v8 }
 0x78e   : > { %1539 = vst.msk [vmem:[#allocation2 + $0x7] sm:$0x1] %vm1513_vm8, %v1537_v13  ;;  %v1552_v0 = vadd.f32 %v1551_v14, %v1540_v12 }
 0x790   : > { %1553 = vst.msk [vmem:[#allocation2 + $0x8] sm:$0x1] %vm1513_vm8, %v1552_v0 }
 0x791 PF: > { %p2266_p7 = scmp.ne.s32.totalorder %s2618_s24, 3 }
 0x792   : > { %vm1597_vm10 = vcmask (!%p2266_p7), 1044480   ;;  %v2637_v15 = vmov (!%p2266_p7), 0.0   ;;  %v2569_v16 = vld [vmem:[%s3111_s3] sm:$0x1f] (!%p2266_p7)   ;;  %vm2638_vm11 = vmmov (!%p2266_p7), 0   ;;  %vm1593_vm12 = vcmask (!%p2266_p7), 80896  }
 0x793   : > { %1557 = sbr.rel (%p2266_p7) target bundleno = 3092 (0xc14), region = 76  ;;  %2413 = vmatprep.subr.bf16.mxu0 (!%p2266_p7), %v2637_v15  ;;  %2419 = vmatprep.subr.bf16.mxu1 (!%p2266_p7), %v2637_v15  ;;  %v1599_v17 = vsel (!%p2266_p7), %vm1597_vm10, %v2569_v16, 0  ;;  %v2570_v18 = vld [vmem:[%s3109_s1] sm:$0xff] (!%p2266_p7)   ;;  %v2639_v20 = vmov (!%p2266_p7), 0   ;;  %v2572_v21 = vld [vmem:[%s3110_s2 + $0x8] sm:$0xff] (!%p2266_p7)   ;;  %v2573_v22 = vld [vmem:[%s3110_s2 + $0x10] sm:$0xff] (!%p2266_p7)   ;;  %v1767_v49 = vlaneseq (!%p2266_p7) }
 0x794   : > { %2415 = vmatprep.mubr.msk.bf16.mxu0 (!%p2266_p7), %vm2638_vm11, %v2637_v15  ;;  %2435 = vmatprep.mubr.msk.bf16.mxu1 (!%p2266_p7), %vm2638_vm11, %v2637_v15  ;;  %v2571_v19 = vld [vmem:[%s3110_s2] sm:$0xff] (!%p2266_p7)   ;;  %vm1708_vm13 = vcmask (!%p2266_p7), 179200   ;;  %v2574_v25 = vld [vmem:[%s3110_s2 + $0x18] sm:$0xff] (!%p2266_p7)   ;;  %v2585_v26 = vld [vmem:[%s3112_s4 + $0x8] sm:$0xff] (!%p2266_p7)   ;;  %vm1712_vm14 = vcmask (!%p2266_p7), 1042432   ;;  %vm1947_vm2 = vcmask (!%p2266_p7), 261120  }
 0x795   : > { %2414 = vmatpush3.bf16.msra.mxu0 (!%p2266_p7), %v1599_v17  ;;  %v2581_v23 = vld [vmem:[%s3108_s0 + $0x4] ss:$8 sps:$4 sm:$0xff] (!%p2266_p7)   ;;  %v2586_v28 = vld [vmem:[%s3112_s4 + $0x10] sm:$0xff] (!%p2266_p7)   ;;  %v2587_v30 = vld [vmem:[%s3112_s4 + $0x18] sm:$0xff] (!%p2266_p7)   ;;  %v1768_v50 = vshrl.u32 (!%p2266_p7), %v1767_v49, 7  ;;  %s2640_s11 = smov (!%p2266_p7), 64  }
 0x796   : > { %1716 = vmatprep.subr.bf16.mxu0 (!%p2266_p7), %v2639_v20  ;;  %v2584_v24 = vld [vmem:[%s3112_s4] sm:$0xff] (!%p2266_p7)   ;;  %v2576_v29 = vld [vmem:[%s3110_s2 + $0x28] sm:$0xff] (!%p2266_p7)   ;;  %v2577_v31 = vld [vmem:[%s3110_s2 + $0x30] sm:$0xff] (!%p2266_p7)   ;;  %vm2090_vm4 = vcmask (!%p2266_p7), 523264  }
 0x797   : > { %2420 = vmatpush3.bf16.msra.mxu1 (!%p2266_p7), %v2584_v24  ;;  %v2575_v27 = vld [vmem:[%s3110_s2 + $0x20] sm:$0xff] (!%p2266_p7)   ;;  %v2578_v32 = vld [vmem:[%s3110_s2 + $0x38] sm:$0xff] (!%p2266_p7)   ;;  %v2580_v34 = vld [vmem:[%s3110_s2 + $0x48] ss:$0 sps:$4 sm:$0x77] (!%p2266_p7)   ;;  %v3050_v52 = vsub.s32 (!%p2266_p7), 0, %v1768_v50 }
 0x798   : > { %2416 = vmatmul.mubr.msk.bf16.vlgmr.msra.gmra.mrb[0].mxu0 (!%p2266_p7), %vm1593_vm12, %v2570_v18  ;;  %2421 = vmatprep.subr.bf16.mxu1 (!%p2266_p7), %v2637_v15  ;;  %v2579_v33 = vld [vmem:[%s3110_s2 + $0x40] sm:$0xff] (!%p2266_p7)   ;;  %v1714_v35 = vsel (!%p2266_p7), %vm1712_vm14, %v2580_v34, 0  ;;  %v2589_v38 = vld [vmem:[%s3112_s4 + $0x28] sm:$0xff] (!%p2266_p7)   ;;  %v2590_v39 = vld [vmem:[%s3112_s4 + $0x30] sm:$0xff] (!%p2266_p7)  }
 0x799   : > { %1717 = vmatpush1.bf16.msra.mxu0 (!%p2266_p7), %v2571_v19  ;;  %2282 = vmatprep.mubr.msk.bf16.mxu0 (!%p2266_p7), %vm1708_vm13, %v2581_v23  ;;  %v2583_v36 = vld [vmem:[%s3108_s0] ss:$8 sps:$4 sm:$0xff] (!%p2266_p7)   ;;  %v2591_v40 = vld [vmem:[%s3112_s4 + $0x38] sm:$0xff] (!%p2266_p7)   ;;  %v1906_v12 = vld [vmem:[#allocation2 + $0x4] sm:$0x1] (!%p2266_p7) }
 0x79a   : > { %1718 = vmatprep.subr.bf16.mxu0 %v2639_v20  ;;  %v2588_v37 = vld [vmem:[%s3112_s4 + $0x20] sm:$0xff]   ;;  %v1907_v13 = vmul.f32 0.125, %v1906_v12  ;;  %v2053_v12 = vld [vmem:[#allocation2 + $0x8] sm:$0x1] }
 0x79b   : > { %2422 = vmatpush3.bf16.msra.mxu1 %v2585_v26  ;;  %v1758_v41 = vld [vmem:[#allocation2 + $0x1] sm:$0x1]  ;;  %v1760_v44 = vld [vmem:[#allocation2 + $0x2] sm:$0x1]  ;;  %v1757_v51 = vld [vmem:[#allocation2] sm:$0x1] }
 0x79c   : > { %2423 = vmatprep.subr.bf16.mxu1 %v2637_v15  ;;  %v1759_v43 = vmul.f32 0.125, %v1758_v41  ;;  %v1761_v45 = vmul.f32 0.125, %v1760_v44  ;;  %v2283_v59 = vld [vmem:[%s3114_s6] ss:$0 sm:$0xff]  ;;  %v2284_v1 = vld [vmem:[%s3114_s6 + $0x1] ss:$0 sm:$0xff]  ;;  %v1910_v16 = vmul.f32 %v1907_v13, %v1907_v13 }
 0x79d   : > { %1719 = vmatpush1.bf16.msra.mxu0 %v2572_v21  ;;  %v1908_v14 = vld [vmem:[#allocation2 + $0x5] sm:$0x1]  ;;  %v1905_v19 = vld [vmem:[#allocation2 + $0x3] sm:$0x1] }
 0x79e   : > { %1720 = vmatprep.subr.bf16.mxu0 %v2639_v20  ;;  %v1762_v46 = vmul.f32 %v1759_v43, %v1759_v43  ;;  %v1766_v42 = vadd.f32 %v1759_v43, %v1757_v51  ;;  %v1909_v0 = vmul.f32 0.125, %v1908_v14 }
 0x79f   : > { %2424 = vmatpush3.bf16.msra.mxu1 %v2586_v28 }
 0x7a0   : > { %2425 = vmatprep.subr.bf16.mxu1 %v2637_v15  ;;  %v1763_v47 = vsub.f32 %v1761_v45, %v1762_v46  ;;  %v1770_v54 = vrot.slane %v1766_v42, %v3050_v52  ;;  %v1911_v17 = vsub.f32 %v1909_v0, %v1910_v16 }
 0x7a1   : > { %1721 = vmatpush1.bf16.msra.mxu0 %v2573_v22 }
 0x7a2   : > { %1722 = vmatprep.subr.bf16.mxu0 %v2639_v20  ;;  %v1773_v48 = vadd.f32 1e-05, %v1763_v47  ;;  %v1921_v18 = vadd.f32 1e-05, %v1911_v17  ;;  %v2050_v17 = vld [vmem:[#allocation2 + $0x6] sm:$0x1] }
 0x7a3   : > { %2426 = vmatpush3.bf16.msra.mxu1 %v2587_v30 }
 0x7a4   : > { %2427 = vmatprep.subr.bf16.mxu1 %v2637_v15  ;;  %2594 = vrsqrt.f32 %v1773_v48 }
 0x7a5   : > { %1723 = vmatpush1.bf16.msra.mxu0 %v2574_v25  ;;  %2596 = vrsqrt.f32 %v1921_v18 }
 0x7a6   : > { %1724 = vmatprep.subr.bf16.mxu0 %v2639_v20 }
 0x7a7   : > { %2428 = vmatpush3.bf16.msra.mxu1 %v2588_v37 }
 0x7a8   : > { %2429 = vmatprep.subr.bf16.mxu1 %v2637_v15 }
 0x7a9   : > { %1725 = vmatpush1.bf16.msra.mxu0 %v2575_v27  ;;  %v2293_v27 = vld [vmem:[%s3114_s6 + $0x2] ss:$0 sm:$0xff] }
 0x7aa   : > { %1726 = vmatprep.subr.bf16.mxu0 %v2639_v20 }
 0x7ab   : > { %2430 = vmatpush3.bf16.msra.mxu1 %v2589_v38 }
 0x7ac   : > { %2431 = vmatprep.subr.bf16.mxu1 %v2637_v15 }
 0x7ad   : > { %1727 = vmatpush1.bf16.msra.mxu0 %v2576_v29 }
 0x7ae   : > { %1728 = vmatprep.subr.bf16.mxu0 %v2639_v20  ;;  %v2595_v53 = vpop.eup %2594 }
 0x7af   : > { %2432 = vmatpush3.bf16.msra.mxu1 %v2590_v39  ;;  %v1778_v55 = vrot.slane %v2595_v53, %v3050_v52  ;;  %v2597_v21 = vpop.eup %2596 }
 0x7b0   : > { %2433 = vmatprep.subr.bf16.mxu1 %v2637_v15  ;;  %v1926_v23 = vrot.slane %v2597_v21, %v3050_v52 }
 0x7b1   : > { %1729 = vmatpush1.bf16.msra.mxu0 %v2577_v31 }
 0x7b2   : > { %1730 = vmatprep.subr.bf16.mxu0 %v2639_v20 }
 0x7b3   : > { %2434 = vmatpush3.bf16.msra.mxu1 %v2591_v40 }
 0x7b4   : > { %2439 = vmatprep.subr.bf16.mxu1 %v2637_v15 }
 0x7b5   : > { %1731 = vmatpush1.bf16.msra.mxu0 %v2578_v32  ;;  %v2294_v32 = vld [vmem:[%s3114_s6 + $0x3] ss:$0 sm:$0xff] }
 0x7b6   : > { %1732 = vmatprep.subr.bf16.mxu0 %v2639_v20 }
 0x7b9   : > { %1733 = vmatpush1.bf16.msra.mxu0 %v2579_v33 }
 0x7ba   : > { %1734 = vmatprep.subr.bf16.mxu0 %v2639_v20  ;;  %v1914_v20 = vadd.f32 %v1907_v13, %v1905_v19  ;;  %v2054_v13 = vmul.f32 0.125, %v2053_v12 }
 0x7bc   : > { %v1918_v22 = vrot.slane %v1914_v20, %v3050_v52 }
 0x7bd   : > { %1735 = vmatpush1.bf16.msra.mxu0 %v1714_v35 }
 0x7c0   : > { %1749 = vmatmul.mubr.bf16.vlgmr.msra.gmra.mrb[0].mxu0 %v2583_v36 }
 0x893   : > { %v1750_v56 = vpop.f32.mrb[0].mxu0 }
 0x894   : > { %v1771_v57 = vsub.f32 %v1750_v56, %v1770_v54  ;;  %v1752_v58 = vpop.f32.mrb[1].mxu0  ;;  %v2593_v56 = vld [vmem:[%s3113_s5 + $0x8] sm:$0xff]  }
 0x895   : > { %v1753_v60 = vpop.f32.mrb[2].mxu0 }
 0x896   : > { %v1779_v61 = vmul.f32 %v1778_v55, %v1771_v57  ;;  %v1772_v62 = vsub.f32 %v1753_v60, %v1770_v54  ;;  %v1755_v63 = vpop.f32.mrb[3].mxu0 }
 0x898   : > { %v1785_v2 = vmul.f32 %v2283_v59, %v1779_v61  ;;  %v1780_v3 = vmul.f32 %v1778_v55, %v1772_v62  ;;  %v2592_v55 = vld [vmem:[%s3113_s5] sm:$0xff]  }
 0x89a   : > { %v1791_v4 = vadd.f32 %v2284_v1, %v1785_v2  ;;  %v1786_v5 = vmul.f32 %v2283_v59, %v1780_v3  ;;  %v2295_v2 = vld [vmem:[%s3114_s6 + $0x4] ss:$0 sm:$0xff] }
 0x89c   : > { %v1792_v6 = vadd.f32 %v2284_v1, %v1786_v5  ;;  %v1795_v7 = vmul.f32 0.01, %v1791_v4  ;;  %vm1793_vm15 = vcmp.ge.f32.partialorder %v1791_v4, 0.0  ;;  %v2296_v5 = vld [vmem:[%s3114_s6 + $0x5] ss:$0 sm:$0xff] }
 0x89e   : > { %vm1794_vm0 = vcmp.ge.f32.partialorder %v1792_v6, 0.0  ;;  %v1796_v8 = vmul.f32 0.01, %v1792_v6  ;;  %v1797_v9 = vsel %vm1793_vm15, %v1791_v4, %v1795_v7 }
 0x8a0   : > { %v1798_v10 = vsel %vm1794_vm0, %v1792_v6, %v1796_v8 }
 0x8a1   : > { %v1799_v11 = vpack.c.bf16 %v1798_v10, %v1797_v9  ;;  %v2051_v10 = vld [vmem:[#allocation2 + $0x7] sm:$0x1] }
 0x8a3   : > { %2436 = vmatmul.mubr.bf16.vlgmr.msra.gmra.mrb[0].mxu1 %v1799_v11  ;;  %v2052_v11 = vmul.f32 0.125, %v2051_v10 }
 0x8a4   : > { %2443 = vmatprep.mubr.msk.bf16.mxu1 %vm2638_vm11, %v2637_v15  ;;  %2440 = vmatpush3.bf16.msra.mxu1 %v2592_v55 }
 0x8a5   : > { %2441 = vmatprep.subr.bf16.mxu1 %v2637_v15  ;;  %v2055_v14 = vmul.f32 %v2052_v11, %v2052_v11  ;;  %v2059_v18 = vadd.f32 %v2052_v11, %v2050_v17 }
 0x8a7   : > { %v2056_v0 = vsub.f32 %v2054_v13, %v2055_v14  ;;  %v2063_v20 = vrot.slane %v2059_v18, %v3050_v52 }
 0x8a8   : > { %2442 = vmatpush3.bf16.msra.mxu1 %v2593_v56 }
 0x8a9   : > { %v2066_v16 = vadd.f32 1e-05, %v2056_v0 }
 0x976   : > { %v1898_v24 = vpop.f32.mrb[0].mxu1 }
 0x977   : > { %v1919_v25 = vsub.f32 %v1898_v24, %v1918_v22  ;;  %v2437_v26 = vpop.f32.mrb[1].mxu1 }
 0x978   : > { %v1901_v28 = vpop.f32.mrb[2].mxu1 }
 0x979   : > { %v1927_v29 = vmul.f32 %v1926_v23, %v1919_v25  ;;  %v1920_v30 = vsub.f32 %v1901_v28, %v1918_v22  ;;  %v2438_v31 = vpop.f32.mrb[3].mxu1  ;;  %v2300_v25 = vld [vmem:[%s3114_s6 + $0x6] ss:$0 sm:$0xff] }
 0x97b   : > { %v1933_v33 = vmul.f32 %v2293_v27, %v1927_v29  ;;  %v1928_v34 = vmul.f32 %v1926_v23, %v1920_v30  ;;  %v2301_v30 = vld [vmem:[%s3114_s6 + $0x7] ss:$0 sm:$0xff] }
 0x97d   : > { %v1934_v35 = vmul.f32 %v2293_v27, %v1928_v34  ;;  %v1939_v36 = vadd.f32 %v2294_v32, %v1933_v33 }
 0x97f   : > { %vm1941_vm1 = vcmp.ge.f32.partialorder %v1939_v36, 0.0  ;;  %v1943_v37 = vmul.f32 0.01, %v1939_v36  ;;  %v1940_v38 = vadd.f32 %v2294_v32, %v1934_v35 }
 0x981   : > { %v1945_v39 = vsel %vm1941_vm1, %v1939_v36, %v1943_v37  ;;  %vm1942_vm3 = vcmp.ge.f32.partialorder %v1940_v38, 0.0  ;;  %v1944_v40 = vmul.f32 0.01, %v1940_v38 }
 0x982   : > { %v1948_v41 = vsel %vm1947_vm2, %v1945_v39, 0.0 }
 0x983   : > { %1949 = vadd.xlane.f32.xlu0 %v1948_v41  ;;  %v1946_v43 = vsel %vm1942_vm3, %v1940_v38, %v1944_v40 }
 0x984   : > { %v1951_v44 = vsel %vm1947_vm2, %v1946_v43, 0.0 }
 0x987   : > { %1952 = vadd.xlane.f32.xlu0 %v1951_v44 }
 0xa10   : > { %v1950_v45 = vpop.xlane.xlu0 %1949 }
 0xa11   : > { %v1955_v46 = vmul.f32 0.03125, %v1950_v45 }
 0xa13   : > { %v1957_v47 = vsub.f32 %v1945_v39, %v1955_v46 }
 0xa14   : > { %v1953_v48 = vpop.xlane.xlu0 %1952 }
 0xa15   : > { %v1956_v49 = vmul.f32 0.03125, %v1953_v48  ;;  %v1959_v50 = vmul.f32 %v1957_v47, %v1957_v47 }
 0xa17   : > { %v1958_v51 = vsub.f32 %v1946_v43, %v1956_v49  ;;  %v1961_v42 = vsel %vm1947_vm2, %v1959_v50, 0.0 }
 0xa18   : > { %1962 = vadd.xlane.f32.xlu1 %v1961_v42 }
 0xa19   : > { %v1960_v53 = vmul.f32 %v1958_v51, %v1958_v51 }
 0xa1b   : > { %v1964_v54 = vsel %vm1947_vm2, %v1960_v53, 0.0 }
 0xa1c   : > { %1965 = vadd.xlane.f32.xlu1 %v1964_v54 }
 0xaa5   : > { %v1963_v57 = vpop.xlane.xlu1 %1962 }
 0xaa6   : > { %v1967_v58 = vmul.f32 0.03125, %v1963_v57 }
 0xaa8   : > { %v1969_v59 = vadd.f32 1e-05, %v1967_v58 }
 0xaa9   : > { %v1966_v60 = vpop.xlane.xlu1 %1965 }
 0xaaa   : > { %2598 = vrsqrt.f32 %v1969_v59  ;;  %v1968_v61 = vmul.f32 0.03125, %v1966_v60 }
 0xaac   : > { %v1970_v62 = vadd.f32 1e-05, %v1968_v61 }
 0xaae   : > { %2600 = vrsqrt.f32 %v1970_v62 }
 0xaaf   : > { %2602 = vrsqrt.f32 %v2066_v16 }
 0xab4   : > { %v2599_v63 = vpop.eup %2598 }
 0xab5   : > { %v1973_v1 = vmul.f32 %v2599_v63, %v1957_v47 }
 0xab7   : > { %v1980_v3 = vmul.f32 %v2295_v2, %v1973_v1 }
 0xab8   : > { %v2601_v15 = vpop.eup %2600 }
 0xab9   : > { %v1974_v4 = vmul.f32 %v2601_v15, %v1958_v51  ;;  %v1987_v7 = vadd.f32 %v2296_v5, %v1980_v3  ;;  %v2603_v19 = vpop.eup %2602 }
 0xaba   : > { %v2071_v21 = vrot.slane %v2603_v19, %v3050_v52 }
 0xabb   : > { %v1981_v6 = vmul.f32 %v2295_v2, %v1974_v4 }
 0xabd   : > { %v1988_v8 = vadd.f32 %v2296_v5, %v1981_v6 }
 0xabf   : > { %v1989_v9 = vpack.c.bf16 %v1988_v8, %v1987_v7 }
 0xac1   : > { %2444 = vmatmul.mubr.msk.bf16.vlgmr.msra.gmra.mrb[4].mxu1 %vm1947_vm2, %v1989_v9 }
 0xb94   : > { %v2043_v22 = vpop.f32.mrb[4].mxu1 }
 0xb95   : > { %v2064_v23 = vsub.f32 %v2043_v22, %v2063_v20  ;;  %v2445_v24 = vpop.f32.mrb[5].mxu1 }
 0xb96   : > { %v2046_v26 = vpop.f32.mrb[6].mxu1 }
 0xb97   : > { %v2072_v27 = vmul.f32 %v2071_v21, %v2064_v23  ;;  %v2065_v28 = vsub.f32 %v2046_v26, %v2063_v20  ;;  %v2446_v29 = vpop.f32.mrb[7].mxu1 }
 0xb99   : > { %v2078_v31 = vmul.f32 %v2300_v25, %v2072_v27  ;;  %v2073_v32 = vmul.f32 %v2071_v21, %v2065_v28 }
 0xb9b   : > { %v2079_v33 = vmul.f32 %v2300_v25, %v2073_v32  ;;  %v2084_v34 = vadd.f32 %v2301_v30, %v2078_v31 }
 0xb9d   : > { %v2085_v52 = vadd.f32 %v2301_v30, %v2079_v33 }
 0xb9f   : > { %2087 = vrot.lane.b32.xlu0 %v2085_v52, %s2640_s11 }
 0xc11   : > { %v2088_v35 = vpop.permute.xlu0 %2087 }
 0xc12   : > { %v2091_v36 = vsel %vm2090_vm4, %v2084_v34, %v2088_v35 }
 0xc13   : > { %2092 = vst [vmem:[%s3115_s7] sm:$0xff] %v2091_v36 }
 0xc14 PF: > { %s17_s26 = sadd.s32 1, %s2626_s26   ;;  %s3116_s24 = smov %s2622_s25 }
 0xc15   : > { %p14_p8 = scmp.ge.s32.totalorder %s17_s26, 6   ;;  %s3117_s25 = smov %s3119_s27 }
 0xc17   :  { %16 = sbr.rel (!%p14_p8) target bundleno = 2 (0x2), region = 109 }

</bundles_post_ra>
